<compile_context>
chip_gen: v7x
topology: tpu7x:2x2x1
jax: 0.10.0
libtpu: 0.0.40
codegen_flags: <defaults>
</compile_context>

<pallas_src>
import functools

import jax
import jax.numpy as jnp
from jax.experimental import pallas as pl
from jax.experimental.pallas import tpu as pltpu

H = 768            # feature size implied by the module (g_W1: 768 -> 768)
EPS = 1e-6
BLOCK_M_MAX = 512  # rows per grid step. ~10.6 MiB VMEM at f32 (2x x-tile,
                   # 2x out-tile, resident W) -> fits the 32 MiB scoped
                   # default on v5e/v6e and v7x (64 MiB physical).


# ------------------------------ kernel ------------------------------------ #

def _fused_kernel(x_ref, a_ref, b_ref, w_ref, bias_ref, o_ref):
    """out = x + (LayerNorm(x) @ W + bias), one (block_m, H) tile per step."""
    x = x_ref[...].astype(jnp.float32)                              # (bm, H)
    h = x.shape[-1]
    mean = jnp.mean(x, axis=-1, keepdims=True)                      # (bm, 1)
    d = x - mean
    var = jnp.sum(d * d, axis=-1, keepdims=True) * (1.0 / (h - 1))  # unbiased (torch.std)
    # Per-row reciprocal on the (bm, 1) column, then multiply: avoids a full
    # (bm, H) broadcast divide on the VALU.
    inv = pl.reciprocal(jnp.sqrt(var) + EPS)
    a = a_ref[...].astype(jnp.float32)                              # (1, H), hoisted once per tile
    b = b_ref[...].astype(jnp.float32)
    normed = a * (d * inv) + b
    # MXU matmul; LHS cast to W's dtype (pass W as bf16 on v5e/v6e/v7x for the
    # bf16-native MXU), accumulation kept in f32.
    acc = jnp.dot(normed.astype(w_ref.dtype), w_ref[...],
                  preferred_element_type=jnp.float32)               # (bm, H)
    # TODO(synk): dropout is identity in eval mode; training-mode RNG masking
    # is not implemented here.
    o_ref[...] = (x + acc + bias_ref[...].astype(jnp.float32)).astype(o_ref.dtype)


# ------------------------------ wrapper ------------------------------------ #

def _round_up(n, k):
    return (n + k - 1) // k * k


def _pick_block_m(m):
    # Large tiles to approach the HBM roofline, but keep >= 2 grid steps when
    # possible so v7x's two TensorCores both get rows to work on.
    bm = min(BLOCK_M_MAX, _round_up(max(1, (m + 1) // 2), 8))
    return max(8, min(bm, _round_up(m, 8)))


def sublayer_connection1(x, a_2, b_2, w, bias, *, block_m=None,
                         use_bf16_matmul=False):
    """x: [B, S, H]. Returns x + dropout(Linear(LayerNorm(x))) (eval dropout).

    w is [H_in, H_out] (already transposed from PyTorch's [out, in]).
    TODO(synk): arbitrary (non-Linear) `sublayer` callables are not fused here;
    they would need their own kernel composed with LayerNorm + residual passes.
    """
    bsz, seq, h = x.shape
    m = bsz * seq
    x2d = x.reshape(m, h)
    if use_bf16_matmul:
        # bf16-native MXU path (recommended on v5e/v6e/v7x); f32 accumulate.
        w = w.astype(jnp.bfloat16)
    bm = block_m if block_m is not None else _pick_block_m(m)
    # Partial last tile is safe: layernorm/matmul/residual are all row-wise,
    # so out-of-bounds rows never contaminate valid rows, and OOB output
    # writes are dropped by the pipeline.
    grid = (pl.cdiv(m, bm),)
    out2d = pl.pallas_call(
        _fused_kernel,
        out_shape=jax.ShapeDtypeStruct((m, h), x.dtype),
        grid_spec=pltpu.PrefetchScalarGridSpec(
            num_scalar_prefetch=0,
            grid=grid,
            in_specs=[
                pl.BlockSpec((bm, h), lambda i: (i, 0)),   # x tile
                pl.BlockSpec((1, h), lambda i: (0, 0)),    # a_2 (LayerNorm scale)
                pl.BlockSpec((1, h), lambda i: (0, 0)),    # b_2 (LayerNorm shift)
                pl.BlockSpec((h, h), lambda i: (0, 0)),    # W, resident in VMEM
                pl.BlockSpec((1, h), lambda i: (0, 0)),    # bias
            ],
            out_specs=pl.BlockSpec((bm, h), lambda i: (i, 0)),
        ),
        compiler_params=pltpu.CompilerParams(
            dimension_semantics=("parallel",)),
    )(x2d, a_2.reshape(1, h), b_2.reshape(1, h), w, bias.reshape(1, h))
    return out2d.reshape(bsz, seq, h)


# ------------------------------- demo -------------------------------------- #

def xavier_uniform(key, shape):
    fan_in, fan_out = shape[0], shape[1]
    limit = (6.0 / (fan_in + fan_out)) ** 0.5
    return jax.random.uniform(key, shape, jnp.float32, -limit, limit)


if __name__ == "__main__":
    key = jax.random.PRNGKey(0)
    k_x, k_w1 = jax.random.split(key, 2)

    B, S = 2, 8
    x = jax.random.normal(k_x, (B, S, H), dtype=jnp.float32)

    # LayerNorm parameters (a_2 = ones, b_2 = zeros as in __init__)
    a_2 = jnp.ones((H,), jnp.float32)
    b_2 = jnp.zeros((H,), jnp.float32)

    # g_W1 linear (xavier_uniform weight, zero bias) used as the demo sublayer.
    w1 = xavier_uniform(k_w1, (H, H))          # stored as [in, out]
    bias1 = jnp.zeros((H,), jnp.float32)

    # f32 path (matches torch f32 semantics, tight tolerance).
    run = jax.jit(sublayer_connection1)
    out = run(x, a_2, b_2, w1, bias1)
    jax.block_until_ready(out)

    # pure-JAX reference (unbiased std, eps on std)
    x2d = x.reshape(B * S, H)
    mean = jnp.mean(x2d, -1, keepdims=True)
    d = x2d - mean
    std = jnp.sqrt(jnp.sum(d * d, -1, keepdims=True) / (H - 1))
    normed_ref = a_2 * d / (std + EPS) + b_2
    ref = (x2d + (normed_ref @ w1 + bias1)).reshape(B, S, H)
    assert jnp.allclose(out, ref, atol=1e-4, rtol=1e-4)

    # bf16-MXU path (generation-specific optimization); relative-L2 check.
    run_bf16 = jax.jit(functools.partial(sublayer_connection1,
                                         use_bf16_matmul=True, block_m=16))
    out_bf16 = run_bf16(x, a_2, b_2, w1, bias1)
    jax.block_until_ready(out_bf16)
    rel_err = jnp.linalg.norm(out_bf16 - ref) / jnp.linalg.norm(ref)
    assert rel_err < 3e-2

    print("KERNEL_OK")
</pallas_src>

<mosaic_0001>
module attributes {stable_mosaic.version = 11 : i64} {
  func.func @_fused_kernel(%arg0: i32, %arg1: memref<8x768xf32, #tpu.memory_space<vmem>>, %arg2: memref<1x768xf32, #tpu.memory_space<vmem>>, %arg3: memref<1x768xf32, #tpu.memory_space<vmem>>, %arg4: memref<768x768xf32, #tpu.memory_space<vmem>>, %arg5: memref<1x768xf32, #tpu.memory_space<vmem>>, %arg6: memref<8x768xf32, #tpu.memory_space<vmem>>) attributes {dimension_semantics = [#tpu.dimension_semantics<parallel>], iteration_bounds = array<i64: 2>, scalar_prefetch = 0 : i64, scratch_operands = 0 : i64, tpu.core_type = #tpu.core_type<tc>, window_params = [{transform_indices = @transform_0, window_bounds = array<i64: 8, 768>}, {pipeline_mode = #tpu.pipeline_mode<synchronous>, transform_indices = @transform_1, window_bounds = array<i64: 1, 768>}, {pipeline_mode = #tpu.pipeline_mode<synchronous>, transform_indices = @transform_2, window_bounds = array<i64: 1, 768>}, {pipeline_mode = #tpu.pipeline_mode<synchronous>, transform_indices = @transform_3, window_bounds = array<i64: 768, 768>}, {pipeline_mode = #tpu.pipeline_mode<synchronous>, transform_indices = @transform_4, window_bounds = array<i64: 1, 768>}, {transform_indices = @transform_5, window_bounds = array<i64: 8, 768>}]} {
    %c0 = arith.constant 0 : index
    %c0_0 = arith.constant 0 : index
    %0 = vector.load %arg1[%c0, %c0_0] : memref<8x768xf32, #tpu.memory_space<vmem>>, vector<8x768xf32>
    %cst = arith.constant dense<0.000000e+00> : vector<8xf32>
    %1 = vector.multi_reduction <add>, %0, %cst [1] : vector<8x768xf32> to vector<8xf32>
    %2 = vector.shape_cast %1 : vector<8xf32> to vector<8x1xf32>
    %cst_1 = arith.constant 7.680000e+02 : f32
    %3 = vector.broadcast %cst_1 : f32 to vector<8x1xf32>
    %4 = arith.divf %2, %3 : vector<8x1xf32>
    %5 = vector.broadcast %4 : vector<8x1xf32> to vector<8x768xf32>
    %6 = arith.subf %0, %5 : vector<8x768xf32>
    %7 = arith.mulf %6, %6 : vector<8x768xf32>
    %cst_2 = arith.constant dense<0.000000e+00> : vector<8xf32>
    %8 = vector.multi_reduction <add>, %7, %cst_2 [1] : vector<8x768xf32> to vector<8xf32>
    %9 = vector.shape_cast %8 : vector<8xf32> to vector<8x1xf32>
    %cst_3 = arith.constant 0.00130378094 : f32
    %10 = vector.broadcast %cst_3 : f32 to vector<8x1xf32>
    %11 = arith.mulf %9, %10 : vector<8x1xf32>
    %12 = math.sqrt %11 : vector<8x1xf32>
    %cst_4 = arith.constant 9.99999997E-7 : f32
    %13 = vector.broadcast %cst_4 : f32 to vector<8x1xf32>
    %14 = arith.addf %12, %13 : vector<8x1xf32>
    %15 = tpu.reciprocal %14 : vector<8x1xf32> -> vector<8x1xf32>
    %c0_5 = arith.constant 0 : index
    %c0_6 = arith.constant 0 : index
    %16 = vector.load %arg2[%c0_5, %c0_6] : memref<1x768xf32, #tpu.memory_space<vmem>>, vector<1x768xf32>
    %c0_7 = arith.constant 0 : index
    %c0_8 = arith.constant 0 : index
    %17 = vector.load %arg3[%c0_7, %c0_8] : memref<1x768xf32, #tpu.memory_space<vmem>>, vector<1x768xf32>
    %18 = vector.broadcast %15 : vector<8x1xf32> to vector<8x768xf32>
    %19 = arith.mulf %6, %18 : vector<8x768xf32>
    %20 = vector.broadcast %16 : vector<1x768xf32> to vector<8x768xf32>
    %21 = arith.mulf %20, %19 : vector<8x768xf32>
    %22 = vector.broadcast %17 : vector<1x768xf32> to vector<8x768xf32>
    %23 = arith.addf %21, %22 : vector<8x768xf32>
    %c0_9 = arith.constant 0 : index
    %c0_10 = arith.constant 0 : index
    %24 = vector.load %arg4[%c0_9, %c0_10] : memref<768x768xf32, #tpu.memory_space<vmem>>, vector<768x768xf32>
    %cst_11 = arith.constant dense<0.000000e+00> : vector<8x768xf32>
    %25 = tpu.matmul %23, %24, %cst_11 {dimension_numbers = #tpu.dot_dimension_numbers<[1], [0], [0], [1], [0, 0, 1, 1], [], []>} : vector<8x768xf32>, vector<768x768xf32>, vector<8x768xf32> -> vector<8x768xf32>
    %26 = arith.addf %0, %25 : vector<8x768xf32>
    %c0_12 = arith.constant 0 : index
    %c0_13 = arith.constant 0 : index
    %27 = vector.load %arg5[%c0_12, %c0_13] : memref<1x768xf32, #tpu.memory_space<vmem>>, vector<1x768xf32>
    %28 = vector.broadcast %27 : vector<1x768xf32> to vector<8x768xf32>
    %29 = arith.addf %26, %28 : vector<8x768xf32>
    %c0_14 = arith.constant 0 : index
    %c0_15 = arith.constant 0 : index
    %30 = vector.load %arg6[%c0_14, %c0_15] : memref<8x768xf32, #tpu.memory_space<vmem>>, vector<8x768xf32>
    tpu.vector_store %arg6[%c0_14, %c0_15], %29 {strides = array<i32>} : memref<8x768xf32, #tpu.memory_space<vmem>>, vector<8x768xf32>,
    return
  }
  func.func @transform_0(%arg0: i32) -> (i32, i32) {
    %c0_i32 = arith.constant 0 : i32
    %c0_i32_0 = arith.constant 0 : i32
    return %arg0, %c0_i32 : i32, i32
  }
  func.func @transform_1(%arg0: i32) -> (i32, i32) {
    %c0_i32 = arith.constant 0 : i32
    %c0_i32_0 = arith.constant 0 : i32
    %c0_i32_1 = arith.constant 0 : i32
    return %c0_i32, %c0_i32_0 : i32, i32
  }
  func.func @transform_2(%arg0: i32) -> (i32, i32) {
    %c0_i32 = arith.constant 0 : i32
    %c0_i32_0 = arith.constant 0 : i32
    %c0_i32_1 = arith.constant 0 : i32
    return %c0_i32, %c0_i32_0 : i32, i32
  }
  func.func @transform_3(%arg0: i32) -> (i32, i32) {
    %c0_i32 = arith.constant 0 : i32
    %c0_i32_0 = arith.constant 0 : i32
    %c0_i32_1 = arith.constant 0 : i32
    return %c0_i32, %c0_i32_0 : i32, i32
  }
  func.func @transform_4(%arg0: i32) -> (i32, i32) {
    %c0_i32 = arith.constant 0 : i32
    %c0_i32_0 = arith.constant 0 : i32
    %c0_i32_1 = arith.constant 0 : i32
    return %c0_i32, %c0_i32_0 : i32, i32
  }
  func.func @transform_5(%arg0: i32) -> (i32, i32) {
    %c0_i32 = arith.constant 0 : i32
    %c0_i32_0 = arith.constant 0 : i32
    return %arg0, %c0_i32 : i32, i32
  }
}

</mosaic_0001>

<bundles_post_ra>
// kernel: sublayer_connection1.1
= control target key start
LH: loop header
LB: loop body
LE: loop exit
PB: predicated region body
PF: predicated region fallthrough
CT: control target
= control target key end

     0   :  { %10 = vsyncpa [#allocation3], 0  ;;  %s2921_s0 = inlined_call_operand.hbm [shape: f32[16,768], index: 0, kind: input, shape index: {}]   ;;  %s2922_s1 = inlined_call_operand.vmem [shape: f32[1,768], index: 1, kind: input, shape index: {}]   ;;  %s2923_s2 = inlined_call_operand.vmem [shape: f32[1,768], index: 2, kind: input, shape index: {}]   ;;  %s2924_s3 = inlined_call_operand.hbm [shape: f32[768,768], index: 3, kind: input, shape index: {}]   ;;  %s2925_s4 = inlined_call_operand.vmem [shape: f32[1,768], index: 4, kind: input, shape index: {}]   ;;  %s2926_s5 = inlined_call_operand.hbm [shape: f32[16,768], index: 5, kind: output, shape index: {}]  }
   0x1   :  { %12 = vsyncpa [#allocation3 + $0x1], 0 }
   0x2   :  { %13 = vsyncpa [#allocation6], 0 }
   0x3   :  { %14 = vsyncpa [#allocation4], 0 }
   0x4   :  { %16 = vsyncpa [#allocation4 + $0x1], 0  ;;  %s2578_s18 = smov 0   ;;  %s2580_s19 = smov 0  }
   0x5   :  { %s2582_s20 = smov 0   ;;  %s2584_s21 = smov 0  }
   0x6 LB: > { %s2599_s22 = sadd.s32 4294967295, %s2541_s21   ;;  %s1742_s23 = sadd.s32 4294967294, %s2541_s21   ;;  %s2541_s21 = sphi %s2584_s21, %s2946_s21   ;;  %s2537_s20 = sphi %s2582_s20, %s2945_s20   ;;  %s2533_s19 = sphi %s2580_s19, %s2944_s19   ;;  %s2529_s18 = sphi %s2578_s18, %s2943_s18  }
   0x7   : > { %p42_p0 = scmp.ne.s32.totalorder %s2533_s19, %s2529_s18  ;;  %p2927_p1 = scmp.eq.s32.totalorder %s2599_s22, 0 }
   0x8   : > { %p156_p3 = scmp.eq.s32.totalorder %s1742_s23, 1  ;;  %p1743_p5 = scmp.ge.s32.totalorder %s2541_s21, 1 }
   0x9   : > { %p2608_p4 = por %p2927_p1, %p42_p0  ;;  %p163_p7 = scmp.lt.s32.totalorder %s2541_s21, 3 }
   0xa   : > { %p2613_p6 = por %p156_p3, %p42_p0  ;;  %s2543_s27 = smov [#allocation5]  }
   0xb   : > { %s2930_s24 = scalar_select %p2608_p4, 1, 0 }
   0xc   : > { %s2931_s25 = scalar_select %p2613_p6, 1, 0 }
   0xd   : > { %p2618_p8 = pnand %p1743_p5, %p163_p7  ;;  %s181_s28 = sshll.u32 %s2543_s27, 4  ;;  %s2622_s28 = int_to_ptr.vmem [resolvable:$true] %s181_s28 }
   0xe   : > { %s2634_s30 = sadd.s32 1, %s2541_s21   ;;  %s29_s6 = sadd.s32 1, %s2537_s20 }
   0xf   : > { %s2932_s26 = scalar_select %p2618_p8, 1, 0 }
  0x10   : > { %p2352_p9 = pneg %p2618_p8  ;;  %s26_s7 = ssub.s32 %s2541_s21, %s2634_s30 }
  0x11   : > { %s2413_s10 = scalar_lea.hbm %s2924_s3, 73728 }
  0x12   : > { %p2629_p11 = pnand %p2352_p9, %p2927_p1  ;;  %p2414_p12 = scmp.ne.s32.totalorder %s2924_s3, %s2413_s10 }
  0x13   : > { %p2420_p5 = scmp.lt.u32.totalorder %s2413_s10, %s2924_s3 }
  0x14   : > { %p2415_p13 = pneg %p2629_p11 }
  0x16   : > { %p2416_p0 = pnand %p2415_p13, %p2414_p12 }
  0x18   : > { %p2417_p3 = pneg %p2416_p0 }
  0x1a   : > { %p2422_p7 = pnand %p2420_p5, %p2417_p3 }
  0x1c   : > { %2425 = shalt.err (!%p2422_p7)
}
  0x1d   : > { %s2426_s15 = scalar_lea.vmem %s2622_s28, 73728  ;;  %p2434_p2 = scmp.lt.s32.totalorder %s2622_s28, %s2622_s28 }
  0x1e   : > { %p2427_p9 = scmp.ne.s32.totalorder %s2622_s28, %s2426_s15  ;;  %p2435_p6 = scmp.lt.s32.totalorder %s2426_s15, %s2426_s15 }
  0x20   : > { %p2429_p10 = pnand %p2427_p9, %p2415_p13  ;;  %p2436_p4 = por %p2435_p6, %p2434_p2 }
  0x22   : > { %p2430_p1 = pneg %p2429_p10 }
  0x24   : > { %p2437_p8 = pnand %p2436_p4, %p2430_p1 }
  0x26   : > { %2440 = shalt.err (!%p2437_p8)
}
  0x27   : > { %s2544_s16 = smov 768   ;;  %s2545_s17 = smov 48  }
  0x28   : > { %2355 = dma.hbm_to_vmem [thread:$0]  (!%p2629_p11), %s2924_s3, 73728, %s2622_s28, [#allocation6], %s2544_s16, %s2544_s16, %s2545_s17  }
  0x29   : > { %p27_p2 = scmp.eq.s32.totalorder %s26_s7, 0  ;;  %p36_p1 = scmp.ne.s32.totalorder %s2537_s20, %s2533_s19 }
  0x2a   : > { %p37_p4 = scmp.eq.s32.totalorder %s2541_s21, 0  ;;  %p2365_p6 = scmp.lt.s32.totalorder %s2541_s21, 2 }
  0x2b   : > { %s2665_s8 = scalar_select %p27_p2, %s2537_s20, %s29_s6  }
  0x2c   : > { %p38_p8 = por %p37_p4, %p36_p1  ;;  %p2934_p10 = scmp.eq.s32.totalorder %s2599_s22, 1 }
  0x2d   : > { %s198_s10 = sand.u32 1, %s2537_s20   ;;  %s2341_s11 = smul.u32 768, %s2541_s21 }
  0x2e   : > { %p2669_p12 = por %p2934_p10, %p36_p1  ;;  %s2340_s12 = smul.u32 48, %s198_s10 }
  0x2f   : > { %p2675_p13 = pnand %p2365_p6, %p38_p8  ;;  %s2682_s6 = scalar_lea.hbm %s2921_s0, %s2341_s11 }
  0x30   : > { %s202_s13 = scalar_lea.vmem [#allocation2], %s2340_s12  ;;  %s199_s15 = scalar_lea.sflag [#allocation3], %s198_s10 }
  0x31   : > { %s210_s14 = sshll.u32 %s202_s13, 4  ;;  %s2441_s16 = scalar_lea.hbm %s2682_s6, 768  ;;  %s2684_s14 = int_to_ptr.vmem [resolvable:$true] %s210_s14 }
  0x32   : > { %p2442_p11 = scmp.ne.s32.totalorder %s2682_s6, %s2441_s16  ;;  %p2443_p0 = pneg %p2675_p13 }
  0x33   : > { %s2446_s27 = scalar_lea.hbm %s2921_s0, 1536  ;;  %p2447_p7 = scmp.lt.u32.totalorder %s2682_s6, %s2921_s0 }
  0x34   : > { %p2444_p3 = pnand %p2443_p0, %p2442_p11  ;;  %p2448_p9 = scmp.lt.u32.totalorder %s2446_s27, %s2441_s16 }
  0x35   : > { %p2450_p1 = scmp.lt.u32.totalorder %s2441_s16, %s2682_s6 }
  0x36   : > { %p2445_p5 = pneg %p2444_p3  ;;  %p2449_p2 = por %p2448_p9, %p2447_p7 }
  0x38   : > { %p2451_p4 = por %p2450_p1, %p2449_p2 }
  0x3a   : > { %p2452_p6 = pnand %p2451_p4, %p2445_p5 }
  0x3c   : > { %2455 = shalt.err (!%p2452_p6)
}
  0x3d   : > { %s2456_s10 = scalar_lea.vmem %s2684_s14, 768  ;;  %s2546_s12 = smov [#allocation2]  }
  0x3e   : > { %p2457_p8 = scmp.ne.s32.totalorder %s2684_s14, %s2456_s10  ;;  %s2461_s7 = sshll.u32 %s2546_s12, 4  ;;  %s2462_s7 = int_to_ptr.vmem [resolvable:$false] %s2461_s7 }
  0x3f   : > { %s2463_s13 = scalar_lea.vmem %s2462_s7, 1536  ;;  %p2464_p3 = scmp.lt.s32.totalorder %s2684_s14, %s2462_s7 }
  0x40   : > { %p2459_p10 = pnand %p2457_p8, %p2443_p0  ;;  %p2465_p7 = scmp.lt.s32.totalorder %s2463_s13, %s2456_s10 }
  0x42   : > { %p2460_p11 = pneg %p2459_p10  ;;  %p2466_p9 = por %p2465_p7, %p2464_p3 }
  0x44   : > { %p2467_p2 = pnand %p2466_p9, %p2460_p11 }
  0x46   : > { %2470 = shalt.err (!%p2467_p2)
}
  0x47   : > { %2359 = dma.hbm_to_vmem [thread:$0]  (!%p2675_p13), %s2682_s6, 768, %s2684_s14, %s199_s15  }
  0x48   : > { %p2937_p5 = scmp.ne.s32.totalorder %s2932_s26, 0 }
  0x49   : > { %s2714_s16 = sand.u32 (!%p2937_p5), 1, %s2533_s19   ;;  %p2938_p0 = scmp.ne.s32.totalorder (!%p2937_p5), %s2930_s24, 0 }
  0x4a   : > { %219 = sbr.rel (%p2937_p5) target bundleno = 921 (0x399), region = 40  ;;  %s222_s23 = scalar_lea.sflag (!%p2937_p5), [#allocation3], %s2714_s16 }
  0x4b   : > { %s2342_s17 = smul.u32 (!%p2937_p5), 48, %s2714_s16 }
  0x4d   : > { %s2720_s27 = scalar_lea.vmem (!%p2937_p5), [#allocation2], %s2342_s17 }
  0x51   : > { %2516 = dma.done.wait (%p2938_p0), %s222_s23, 768  }
  0x52   : > { %2518 = vsyncadd (%p2938_p0), %s222_s23, 4294966528  ;;  %p2939_p13 = scmp.eq.s32.totalorder %s2599_s22, 0 }
  0x54   : > { %2520 = dma.done.wait (%p2939_p13), [#allocation6], 73728   ;;  %p2940_p1 = pmov %p2939_p13 }
  0x55   : > { %v2731_v0 = vld [vmem:[%s2720_s27] sm:$0xff]  ;;  %v2734_v1 = vld [vmem:[%s2720_s27 + $0x8] sm:$0xff]  ;;  %v2737_v2 = vld [vmem:[%s2720_s27 + $0x10] sm:$0xff]  ;;  %s255_s11 = scalar_lea.vmem [#allocation7], %s2342_s17  ;;  %s2343_s28 = smul.u32 768, %s2599_s22 }
  0x56   : > { %2522 = vsyncadd (%p2940_p1), [#allocation6], 4294893568  ;;  %v262_v3 = vadd.f32 %v2734_v1, %v2731_v0  ;;  %v2742_v4 = vld [vmem:[%s2720_s27 + $0x18] sm:$0xff]  ;;  %v2746_v6 = vld [vmem:[%s2720_s27 + $0x20] sm:$0xff]  ;;  %s1662_s10 = sshll.u32 %s255_s11, 4  ;;  %s1648_s22 = scalar_lea.sflag [#allocation4], %s2714_s16  ;;  %s2879_s10 = int_to_ptr.vmem [resolvable:$true] %s1662_s10 }
  0x57   : > { %v2750_v8 = vld [vmem:[%s2720_s27 + $0x28] sm:$0xff]  ;;  %v382_v16 = vld [vmem:[#allocation5] sm:$0xff]  ;;  %v388_v17 = vld [vmem:[#allocation5 + $0x30] sm:$0xff]  ;;  %s2877_s13 = scalar_lea.hbm %s2926_s5, %s2343_s28  ;;  %s2471_s17 = scalar_lea.vmem %s2879_s10, 768 }
  0x58   : > { %v263_v5 = vadd.f32 %v262_v3, %v2737_v2  ;;  %v383_v11 = vld [vmem:[#allocation5 + $0x8] sm:$0xff]  ;;  %v389_v12 = vld [vmem:[#allocation5 + $0x38] sm:$0xff]  ;;  %v1754_v19 = vpack.c.bf16 %v388_v17, %v382_v16  ;;  %v574_v20 = vld [vmem:[#allocation5 + $0x600] sm:$0xff]  ;;  %p2472_p4 = scmp.ne.s32.totalorder %s2879_s10, %s2471_s17  ;;  %s2547_s23 = smov [#allocation7]  }
  0x59   : > { %v575_v13 = vld [vmem:[#allocation5 + $0x608] sm:$0xff]  ;;  %v1752_v14 = vpack.c.bf16 %v389_v12, %v383_v11  ;;  %v581_v15 = vld [vmem:[#allocation5 + $0x638] sm:$0xff]  ;;  %v580_v21 = vld [vmem:[#allocation5 + $0x630] sm:$0xff] }
  0x5a   : > { %v264_v7 = vadd.f32 %v263_v5, %v2742_v4  ;;  %v1816_v18 = vpack.c.bf16 %v581_v15, %v575_v13  ;;  %v395_v22 = vld [vmem:[#allocation5 + $0x68] sm:$0xff]  ;;  %v1818_v23 = vpack.c.bf16 %v580_v21, %v574_v20  ;;  %v401_v24 = vld [vmem:[#allocation5 + $0x98] sm:$0xff]  ;;  %v394_v29 = vld [vmem:[#allocation5 + $0x60] sm:$0xff]  ;;  %p2473_p6 = pnand %p2472_p4, %p2669_p12 }
  0x5b   : > { %1753 = vmatprep.subr.bf16.mxu1 %v1752_v14  ;;  %v587_v25 = vld [vmem:[#allocation5 + $0x668] sm:$0xff]  ;;  %v593_v26 = vld [vmem:[#allocation5 + $0x698] sm:$0xff]  ;;  %v1756_v27 = vpack.c.bf16 %v401_v24, %v395_v22  ;;  %v400_v30 = vld [vmem:[#allocation5 + $0x90] sm:$0xff] }
  0x5c   : > { %v265_v9 = vadd.f32 %v264_v7, %v2746_v6  ;;  %1817 = vmatprep.subr.bf16.mxu0 %v1816_v18  ;;  %1755 = vmatpush1.bf16.msra.mxu1 %v1754_v19  ;;  %v1820_v28 = vpack.c.bf16 %v593_v26, %v587_v25  ;;  %v586_v31 = vld [vmem:[#allocation5 + $0x660] sm:$0xff]  ;;  %v1758_v32 = vpack.c.bf16 %v400_v30, %v394_v29  ;;  %v592_v33 = vld [vmem:[#allocation5 + $0x690] sm:$0xff]  ;;  %v407_v34 = vld [vmem:[#allocation5 + $0xc8] sm:$0xff]  ;;  %p2474_p8 = pneg %p2473_p6 }
  0x5d   : > { %1819 = vmatpush1.bf16.msra.mxu0 %v1818_v23  ;;  %v413_v35 = vld [vmem:[#allocation5 + $0xf8] sm:$0xff]  ;;  %1757 = vmatprep.subr.bf16.mxu1 %v1756_v27  ;;  %v1822_v36 = vpack.c.bf16 %v592_v33, %v586_v31  ;;  %v599_v38 = vld [vmem:[#allocation5 + $0x6c8] sm:$0xff]  ;;  %v406_v40 = vld [vmem:[#allocation5 + $0xc0] sm:$0xff] }
  0x5e   : > { %v266_v10 = vadd.f32 %v265_v9, %v2750_v8  ;;  %1821 = vmatprep.subr.bf16.mxu0 %v1820_v28  ;;  %v1760_v37 = vpack.c.bf16 %v413_v35, %v407_v34  ;;  %v605_v39 = vld [vmem:[#allocation5 + $0x6f8] sm:$0xff]  ;;  %v412_v42 = vld [vmem:[#allocation5 + $0xf0] sm:$0xff]  ;;  %v598_v43 = vld [vmem:[#allocation5 + $0x6c0] sm:$0xff] }
  0x5f   : > { %v1824_v41 = vpack.c.bf16 %v605_v39, %v599_v38  ;;  %v604_v44 = vld [vmem:[#allocation5 + $0x6f0] sm:$0xff]  ;;  %v1762_v45 = vpack.c.bf16 %v412_v42, %v406_v40  ;;  %v419_v46 = vld [vmem:[#allocation5 + $0x128] sm:$0xff]  ;;  %v425_v47 = vld [vmem:[#allocation5 + $0x158] sm:$0xff] }
  0x60   : > { %267 = vadd.xlane.f32.xlu0 %v266_v10  ;;  %1759 = vmatpush1.bf16.msra.mxu1 %v1758_v32  ;;  %v611_v48 = vld [vmem:[#allocation5 + $0x728] sm:$0xff]  ;;  %v1826_v49 = vpack.c.bf16 %v604_v44, %v598_v43  ;;  %v1764_v50 = vpack.c.bf16 %v425_v47, %v419_v46  ;;  %v617_v51 = vld [vmem:[#allocation5 + $0x758] sm:$0xff]  ;;  %v418_v52 = vld [vmem:[#allocation5 + $0x120] sm:$0xff] }
  0x61   : > { %1823 = vmatpush1.bf16.msra.mxu0 %v1822_v36  ;;  %1761 = vmatprep.subr.bf16.mxu1 %v1760_v37  ;;  %v424_v53 = vld [vmem:[#allocation5 + $0x150] sm:$0xff]  ;;  %v1828_v54 = vpack.c.bf16 %v617_v51, %v611_v48  ;;  %v610_v55 = vld [vmem:[#allocation5 + $0x720] sm:$0xff]  ;;  %v431_v57 = vld [vmem:[#allocation5 + $0x188] sm:$0xff] }
  0x62   : > { %1825 = vmatprep.subr.bf16.mxu0 %v1824_v41  ;;  %v616_v56 = vld [vmem:[#allocation5 + $0x750] sm:$0xff]  ;;  %v437_v58 = vld [vmem:[#allocation5 + $0x1b8] sm:$0xff]  ;;  %v623_v59 = vld [vmem:[#allocation5 + $0x788] sm:$0xff]  ;;  %v1766_v61 = vpack.c.bf16 %v424_v53, %v418_v52 }
  0x63   : > { %v629_v60 = vld [vmem:[#allocation5 + $0x7b8] sm:$0xff]  ;;  %v1830_v62 = vpack.c.bf16 %v616_v56, %v610_v55  ;;  %v1768_v63 = vpack.c.bf16 %v437_v58, %v431_v57  ;;  %v430_v3 = vld [vmem:[#allocation5 + $0x180] sm:$0xff]  ;;  %v436_v5 = vld [vmem:[#allocation5 + $0x1b0] sm:$0xff] }
  0x64   : > { %1763 = vmatpush1.bf16.msra.mxu1 %v1762_v45  ;;  %v622_v7 = vld [vmem:[#allocation5 + $0x780] sm:$0xff]  ;;  %v1832_v9 = vpack.c.bf16 %v629_v60, %v623_v59  ;;  %v628_v10 = vld [vmem:[#allocation5 + $0x7b0] sm:$0xff]  ;;  %v443_v11 = vld [vmem:[#allocation5 + $0x1e8] sm:$0xff]  ;;  %v1770_v15 = vpack.c.bf16 %v436_v5, %v430_v3 }
  0x65   : > { %1827 = vmatpush1.bf16.msra.mxu0 %v1826_v49  ;;  %1765 = vmatprep.subr.bf16.mxu1 %v1764_v50  ;;  %v449_v12 = vld [vmem:[#allocation5 + $0x218] sm:$0xff]  ;;  %v635_v13 = vld [vmem:[#allocation5 + $0x7e8] sm:$0xff]  ;;  %v1834_v16 = vpack.c.bf16 %v628_v10, %v622_v7  ;;  %v442_v18 = vld [vmem:[#allocation5 + $0x1e0] sm:$0xff] }
  0x66   : > { %1829 = vmatprep.subr.bf16.mxu0 %v1828_v54  ;;  %v641_v14 = vld [vmem:[#allocation5 + $0x818] sm:$0xff]  ;;  %v1772_v17 = vpack.c.bf16 %v449_v12, %v443_v11  ;;  %v448_v19 = vld [vmem:[#allocation5 + $0x210] sm:$0xff]  ;;  %v634_v20 = vld [vmem:[#allocation5 + $0x7e0] sm:$0xff] }
  0x67   : > { %v1836_v21 = vpack.c.bf16 %v641_v14, %v635_v13  ;;  %v640_v22 = vld [vmem:[#allocation5 + $0x810] sm:$0xff]  ;;  %v455_v23 = vld [vmem:[#allocation5 + $0x248] sm:$0xff]  ;;  %v461_v24 = vld [vmem:[#allocation5 + $0x278] sm:$0xff]  ;;  %v1774_v27 = vpack.c.bf16 %v448_v19, %v442_v18 }
  0x68   : > { %1767 = vmatpush1.bf16.msra.mxu1 %v1766_v61  ;;  %v647_v25 = vld [vmem:[#allocation5 + $0x848] sm:$0xff]  ;;  %v653_v26 = vld [vmem:[#allocation5 + $0x878] sm:$0xff]  ;;  %v1838_v28 = vpack.c.bf16 %v640_v22, %v634_v20  ;;  %v1776_v29 = vpack.c.bf16 %v461_v24, %v455_v23  ;;  %v454_v30 = vld [vmem:[#allocation5 + $0x240] sm:$0xff] }
  0x69   : > { %1831 = vmatpush1.bf16.msra.mxu0 %v1830_v62  ;;  %1769 = vmatprep.subr.bf16.mxu1 %v1768_v63  ;;  %v460_v31 = vld [vmem:[#allocation5 + $0x270] sm:$0xff]  ;;  %v1840_v32 = vpack.c.bf16 %v653_v26, %v647_v25  ;;  %v646_v33 = vld [vmem:[#allocation5 + $0x840] sm:$0xff]  ;;  %v467_v51 = vld [vmem:[#allocation5 + $0x2a8] sm:$0xff] }
  0x6a   : > { %1833 = vmatprep.subr.bf16.mxu0 %v1832_v9  ;;  %v652_v34 = vld [vmem:[#allocation5 + $0x870] sm:$0xff]  ;;  %v1778_v35 = vpack.c.bf16 %v460_v31, %v454_v30  ;;  %v473_v52 = vld [vmem:[#allocation5 + $0x2d8] sm:$0xff]  ;;  %v659_v53 = vld [vmem:[#allocation5 + $0x8a8] sm:$0xff] }
  0x6b   : > { %v1842_v36 = vpack.c.bf16 %v652_v34, %v646_v33  ;;  %v1780_v54 = vpack.c.bf16 %v473_v52, %v467_v51  ;;  %v466_v55 = vld [vmem:[#allocation5 + $0x2a0] sm:$0xff]  ;;  %v472_v56 = vld [vmem:[#allocation5 + $0x2d0] sm:$0xff]  ;;  %v479_v62 = vld [vmem:[#allocation5 + $0x308] sm:$0xff] }
  0x6c   : > { %1771 = vmatpush1.bf16.msra.mxu1 %v1770_v15  ;;  %v1782_v58 = vpack.c.bf16 %v472_v56, %v466_v55  ;;  %v658_v59 = vld [vmem:[#allocation5 + $0x8a0] sm:$0xff]  ;;  %v664_v60 = vld [vmem:[#allocation5 + $0x8d0] sm:$0xff]  ;;  %v485_v63 = vld [vmem:[#allocation5 + $0x338] sm:$0xff] }
  0x6d   : > { %1835 = vmatpush1.bf16.msra.mxu0 %v1834_v16  ;;  %1773 = vmatprep.subr.bf16.mxu1 %v1772_v17  ;;  %v1846_v61 = vpack.c.bf16 %v664_v60, %v658_v59  ;;  %v671_v3 = vld [vmem:[#allocation5 + $0x908] sm:$0xff]  ;;  %v1784_v5 = vpack.c.bf16 %v485_v63, %v479_v62  ;;  %v677_v7 = vld [vmem:[#allocation5 + $0x938] sm:$0xff]  ;;  %v478_v9 = vld [vmem:[#allocation5 + $0x300] sm:$0xff] }
  0x6e   : > { %1837 = vmatprep.subr.bf16.mxu0 %v1836_v21  ;;  %v484_v10 = vld [vmem:[#allocation5 + $0x330] sm:$0xff]  ;;  %v1848_v11 = vpack.c.bf16 %v677_v7, %v671_v3  ;;  %v670_v13 = vld [vmem:[#allocation5 + $0x900] sm:$0xff]  ;;  %v491_v16 = vld [vmem:[#allocation5 + $0x368] sm:$0xff] }
  0x6f   : > { %v1786_v12 = vpack.c.bf16 %v484_v10, %v478_v9  ;;  %v676_v14 = vld [vmem:[#allocation5 + $0x930] sm:$0xff]  ;;  %v497_v17 = vld [vmem:[#allocation5 + $0x398] sm:$0xff]  ;;  %v683_v18 = vld [vmem:[#allocation5 + $0x968] sm:$0xff] }
  0x70   : > { %1775 = vmatpush1.bf16.msra.mxu1 %v1774_v27  ;;  %v1850_v15 = vpack.c.bf16 %v676_v14, %v670_v13  ;;  %v1788_v19 = vpack.c.bf16 %v497_v17, %v491_v16  ;;  %v689_v20 = vld [vmem:[#allocation5 + $0x998] sm:$0xff]  ;;  %v490_v21 = vld [vmem:[#allocation5 + $0x360] sm:$0xff]  ;;  %v496_v22 = vld [vmem:[#allocation5 + $0x390] sm:$0xff] }
  0x71   : > { %1839 = vmatpush1.bf16.msra.mxu0 %v1838_v28  ;;  %1777 = vmatprep.subr.bf16.mxu1 %v1776_v29  ;;  %v1852_v23 = vpack.c.bf16 %v689_v20, %v683_v18  ;;  %v1790_v24 = vpack.c.bf16 %v496_v22, %v490_v21  ;;  %v682_v25 = vld [vmem:[#allocation5 + $0x960] sm:$0xff]  ;;  %v688_v26 = vld [vmem:[#allocation5 + $0x990] sm:$0xff]  ;;  %v503_v28 = vld [vmem:[#allocation5 + $0x3c8] sm:$0xff] }
  0x72   : > { %1841 = vmatprep.subr.bf16.mxu0 %v1840_v32  ;;  %v1854_v27 = vpack.c.bf16 %v688_v26, %v682_v25  ;;  %v509_v29 = vld [vmem:[#allocation5 + $0x3f8] sm:$0xff]  ;;  %v695_v30 = vld [vmem:[#allocation5 + $0x9c8] sm:$0xff]  ;;  %v502_v33 = vld [vmem:[#allocation5 + $0x3c0] sm:$0xff] }
  0x73   : > { %v1792_v31 = vpack.c.bf16 %v509_v29, %v503_v28  ;;  %v701_v32 = vld [vmem:[#allocation5 + $0x9f8] sm:$0xff]  ;;  %v508_v34 = vld [vmem:[#allocation5 + $0x3f0] sm:$0xff]  ;;  %v539_v63 = vld [vmem:[#allocation5 + $0x4e8] sm:$0xff] }
  0x74   : > { %1779 = vmatpush1.bf16.msra.mxu1 %v1778_v35  ;;  %v1856_v35 = vpack.c.bf16 %v701_v32, %v695_v30  ;;  %v712_v51 = vld [vmem:[#allocation5 + $0xa50] sm:$0xff]  ;;  %v725_v56 = vld [vmem:[#allocation5 + $0xab8] sm:$0xff]  ;;  %v731_v7 = vld [vmem:[#allocation5 + $0xae8] sm:$0xff] }
  0x75   : > { %1843 = vmatpush1.bf16.msra.mxu0 %v1842_v36  ;;  %1781 = vmatprep.subr.bf16.mxu1 %v1780_v54  ;;  %v1794_v36 = vpack.c.bf16 %v508_v34, %v502_v33  ;;  %v533_v54 = vld [vmem:[#allocation5 + $0x4b8] sm:$0xff]  ;;  %v724_v62 = vld [vmem:[#allocation5 + $0xab0] sm:$0xff]  ;;  %v730_v14 = vld [vmem:[#allocation5 + $0xae0] sm:$0xff] }
  0x76   : > { %v737_v9 = vld [vmem:[#allocation5 + $0xb18] sm:$0xff]  ;;  %v544_v13 = vld [vmem:[#allocation5 + $0x510] sm:$0xff]  ;;  %v551_v17 = vld [vmem:[#allocation5 + $0x548] sm:$0xff] }
  0x77   : > { %v736_v16 = vld [vmem:[#allocation5 + $0xb10] sm:$0xff]  ;;  %v557_v18 = vld [vmem:[#allocation5 + $0x578] sm:$0xff]  ;;  %v743_v21 = vld [vmem:[#allocation5 + $0xb48] sm:$0xff] }
  0x78   : > { %1783 = vmatpush1.bf16.msra.mxu1 %v1782_v58  ;;  %v532_v58 = vld [vmem:[#allocation5 + $0x4b0] sm:$0xff]  ;;  %v1808_v20 = vpack.c.bf16 %v557_v18, %v551_v17  ;;  %v749_v22 = vld [vmem:[#allocation5 + $0xb78] sm:$0xff]  ;;  %v742_v26 = vld [vmem:[#allocation5 + $0xb40] sm:$0xff] }
  0x79   : > { %1785 = vmatprep.subr.bf16.mxu1 %v1784_v5  ;;  %v545_v5 = vld [vmem:[#allocation5 + $0x518] sm:$0xff]  ;;  %v556_v25 = vld [vmem:[#allocation5 + $0x570] sm:$0xff]  ;;  %v563_v29 = vld [vmem:[#allocation5 + $0x5a8] sm:$0xff] }
  0x7a   : > { %v1804_v10 = vpack.c.bf16 %v545_v5, %v539_v63  ;;  %v569_v30 = vld [vmem:[#allocation5 + $0x5d8] sm:$0xff]  ;;  %v766_v18 = vld [vmem:[#allocation5 + $0xc00] sm:$0xff] }
  0x7b   : > { %v1812_v33 = vpack.c.bf16 %v569_v30, %v563_v29  ;;  %v761_v34 = vld [vmem:[#allocation5 + $0xbd8] sm:$0xff] }
  0x7c   : > { %1787 = vmatpush1.bf16.msra.mxu1 %v1786_v12  ;;  %v538_v12 = vld [vmem:[#allocation5 + $0x4e0] sm:$0xff] }
  0x7d   : > { %1789 = vmatprep.subr.bf16.mxu1 %v1788_v19  ;;  %v1870_v19 = vpack.c.bf16 %v736_v16, %v730_v14 }
  0x80   : > { %1791 = vmatpush1.bf16.msra.mxu1 %v1790_v24  ;;  %v1872_v24 = vpack.c.bf16 %v749_v22, %v743_v21 }
  0x81   : > { %1793 = vmatprep.subr.bf16.mxu1 %v1792_v31  ;;  %v755_v31 = vld [vmem:[#allocation5 + $0xba8] sm:$0xff] }
  0x84   : > { %1795 = vmatpush1.bf16.msra.mxu1 %v1794_v36  ;;  %v568_v36 = vld [vmem:[#allocation5 + $0x5d0] sm:$0xff] }
  0xed   : > { %v268_v37 = vpop.xlane.xlu0 %267 }
  0xee   : > { %v270_v38 = vmul.f32 0.0013020834, %v268_v37  ;;  %v694_v37 = vld [vmem:[#allocation5 + $0x9c0] sm:$0xff] }
  0xf0   : > { %v2755_v39 = vsub.f32 %v2731_v0, %v270_v38  ;;  %v2758_v40 = vsub.f32 %v2734_v1, %v270_v38  ;;  %v2761_v41 = vsub.f32 %v2737_v2, %v270_v38  ;;  %v2764_v42 = vsub.f32 %v2742_v4, %v270_v38 }
  0xf1   : > { %v2771_v45 = vsub.f32 %v2746_v6, %v270_v38  ;;  %v2776_v46 = vsub.f32 %v2750_v8, %v270_v38  ;;  %v665_v8 = vld [vmem:[#allocation5 + $0x8d8] sm:$0xff]  ;;  %v700_v38 = vld [vmem:[#allocation5 + $0x9f0] sm:$0xff] }
  0xf2   : > { %v277_v43 = vmul.f32 %v2755_v39, %v2755_v39  ;;  %v278_v44 = vmul.f32 %v2758_v40, %v2758_v40  ;;  %v279_v0 = vmul.f32 %v2761_v41, %v2761_v41  ;;  %v280_v2 = vmul.f32 %v2764_v42, %v2764_v42 }
  0xf3   : > { %v281_v47 = vmul.f32 %v2771_v45, %v2771_v45  ;;  %v282_v49 = vmul.f32 %v2776_v46, %v2776_v46  ;;  %v1844_v57 = vpack.c.bf16 %v665_v8, %v659_v53  ;;  %v527_v53 = vld [vmem:[#allocation5 + $0x488] sm:$0xff] }
  0xf4   : > { %v283_v1 = vadd.f32 %v278_v44, %v277_v43  ;;  %v1858_v43 = vpack.c.bf16 %v700_v38, %v694_v37  ;;  %v515_v44 = vld [vmem:[#allocation5 + $0x428] sm:$0xff]  ;;  %v1800_v55 = vpack.c.bf16 %v533_v54, %v527_v53  ;;  %v1876_v37 = vpack.c.bf16 %v761_v34, %v755_v31  ;;  %v754_v38 = vld [vmem:[#allocation5 + $0xba0] sm:$0xff] }
  0xf5   : > { %1845 = vmatprep.subr.bf16.mxu0 %v1844_v57  ;;  %v719_v8 = vld [vmem:[#allocation5 + $0xa88] sm:$0xff]  ;;  %v526_v57 = vld [vmem:[#allocation5 + $0x480] sm:$0xff] }
  0xf6   : > { %v284_v4 = vadd.f32 %v283_v1, %v279_v0  ;;  %1847 = vmatpush1.bf16.msra.mxu0 %v1846_v61  ;;  %v521_v0 = vld [vmem:[#allocation5 + $0x458] sm:$0xff]  ;;  %v707_v1 = vld [vmem:[#allocation5 + $0xa28] sm:$0xff]  ;;  %v1864_v59 = vpack.c.bf16 %v725_v56, %v719_v8  ;;  %v1802_v60 = vpack.c.bf16 %v532_v58, %v526_v57  ;;  %v718_v61 = vld [vmem:[#allocation5 + $0xa80] sm:$0xff]  ;;  %v309_v8 = vlaneseq }
  0xf7   : > { %1849 = vmatprep.subr.bf16.mxu0 %v1848_v11  ;;  %v1866_v3 = vpack.c.bf16 %v724_v62, %v718_v61  ;;  %v1868_v11 = vpack.c.bf16 %v737_v9, %v731_v7 }
  0xf8   : > { %v285_v48 = vadd.f32 %v284_v4, %v280_v2  ;;  %v1796_v2 = vpack.c.bf16 %v521_v0, %v515_v44  ;;  %v713_v4 = vld [vmem:[#allocation5 + $0xa58] sm:$0xff]  ;;  %v310_v57 = vshrl.u32 %v309_v8, 7 }
  0xfa   : > { %v286_v6 = vadd.f32 %v285_v48, %v281_v47  ;;  %1851 = vmatpush1.bf16.msra.mxu0 %v1850_v15  ;;  %v514_v47 = vld [vmem:[#allocation5 + $0x420] sm:$0xff]  ;;  %v520_v48 = vld [vmem:[#allocation5 + $0x450] sm:$0xff]  ;;  %1797 = vmatprep.subr.bf16.mxu1 %v1796_v2  ;;  %v1806_v15 = vpack.c.bf16 %v544_v13, %v538_v12  ;;  %v773_v2 = vld [vmem:[#allocation5 + $0xc38] sm:$0xff]  ;;  %v2784_v58 = vsub.s32 1, %v310_v57  ;;  %v2791_v61 = vsub.s32 0, %v310_v57 }
  0xfb   : > { %1853 = vmatprep.subr.bf16.mxu0 %v1852_v23  ;;  %v550_v23 = vld [vmem:[#allocation5 + $0x540] sm:$0xff]  ;;  %v2793_v62 = vsub.s32 2, %v310_v57  ;;  %v2795_v63 = vsub.s32 5, %v310_v57  ;;  %v2800_v5 = vsub.s32 4, %v310_v57 }
  0xfc   : > { %v287_v50 = vadd.f32 %v286_v6, %v282_v49  ;;  %v1860_v49 = vpack.c.bf16 %v713_v4, %v707_v1  ;;  %v1798_v6 = vpack.c.bf16 %v520_v48, %v514_v47  ;;  %v1810_v28 = vpack.c.bf16 %v556_v25, %v550_v23  ;;  %v767_v1 = vld [vmem:[#allocation5 + $0xc08] sm:$0xff]  ;;  %v385_v4 = vld [vmem:[#allocation5 + $0x18] sm:$0xff]  ;;  %v384_v25 = vld [vmem:[#allocation5 + $0x10] sm:$0xff] }
  0xfd   : > { %v1880_v47 = vpack.c.bf16 %v773_v2, %v767_v1  ;;  %v391_v48 = vld [vmem:[#allocation5 + $0x48] sm:$0xff]  ;;  %v784_v1 = vld [vmem:[#allocation5 + $0xc90] sm:$0xff] }
  0xfe   : > { %288 = vadd.xlane.f32.xlu0 %v287_v50  ;;  %1855 = vmatpush1.bf16.msra.mxu0 %v1854_v27  ;;  %v706_v50 = vld [vmem:[#allocation5 + $0xa20] sm:$0xff]  ;;  %v748_v27 = vld [vmem:[#allocation5 + $0xb70] sm:$0xff] }
  0xff   : > { %1857 = vmatprep.subr.bf16.mxu0 %v1856_v35  ;;  %v1862_v52 = vpack.c.bf16 %v712_v51, %v706_v50  ;;  %1799 = vmatpush1.bf16.msra.mxu1 %v1798_v6  ;;  %v1874_v32 = vpack.c.bf16 %v748_v27, %v742_v26  ;;  %v562_v35 = vld [vmem:[#allocation5 + $0x5a0] sm:$0xff]  ;;  %v396_v2 = vld [vmem:[#allocation5 + $0x70] sm:$0xff] }
 0x100   : > { %1801 = vmatprep.subr.bf16.mxu1 %v1800_v55  ;;  %v1814_v44 = vpack.c.bf16 %v568_v36, %v562_v35  ;;  %v390_v26 = vld [vmem:[#allocation5 + $0x40] sm:$0xff]  ;;  %v397_v36 = vld [vmem:[#allocation5 + $0x78] sm:$0xff] }
 0x102   : > { %1859 = vmatpush1.bf16.msra.mxu0 %v1858_v43  ;;  %v760_v43 = vld [vmem:[#allocation5 + $0xbd0] sm:$0xff] }
 0x103   : > { %1861 = vmatprep.subr.bf16.mxu0 %v1860_v49  ;;  %1803 = vmatpush1.bf16.msra.mxu1 %v1802_v60  ;;  %v1878_v0 = vpack.c.bf16 %v760_v43, %v754_v38  ;;  %v1944_v49 = vpack.c.bf16 %v391_v48, %v385_v4  ;;  %v300_v60 = vld [vmem:[%s2922_s1] sm:$0x3f] }
 0x104   : > { %1805 = vmatprep.subr.bf16.mxu1 %v1804_v10  ;;  %v316_v7 = vrot.slane %v300_v60, %v2784_v58  ;;  %v320_v12 = vrot.slane %v300_v60, %v2793_v62  ;;  %v332_v13 = vrot.slane %v300_v60, %v2795_v63  ;;  %v402_v4 = vld [vmem:[#allocation5 + $0xa0] sm:$0xff] }
 0x105   : > { %v1950_v8 = vpack.c.bf16 %v402_v4, %v396_v2  ;;  %v839_v2 = vld [vmem:[#allocation5 + $0xe48] sm:$0xff]  ;;  %v845_v4 = vld [vmem:[#allocation5 + $0xe78] sm:$0xff] }
 0x106   : > { %1863 = vmatpush1.bf16.msra.mxu0 %v1862_v52 }
 0x107   : > { %1865 = vmatprep.subr.bf16.mxu0 %v1864_v59  ;;  %1807 = vmatpush1.bf16.msra.mxu1 %v1806_v15  ;;  %v2786_v59 = vsub.s32 3, %v310_v57 }
 0x108   : > { %1809 = vmatprep.subr.bf16.mxu1 %v1808_v20 }
 0x109   : > { %v324_v9 = vrot.slane %v300_v60, %v2786_v59 }
 0x10a   : > { %1867 = vmatpush1.bf16.msra.mxu0 %v1866_v3  ;;  %v301_v3 = vld [vmem:[%s2923_s2] sm:$0x3f] }
 0x10b   : > { %1869 = vmatprep.subr.bf16.mxu0 %v1868_v11  ;;  %1811 = vmatpush1.bf16.msra.mxu1 %v1810_v28  ;;  %v353_v10 = vrot.slane %v301_v3, %v2784_v58  ;;  %v312_v11 = vrot.slane %v300_v60, %v2791_v61  ;;  %v361_v15 = vrot.slane %v301_v3, %v2786_v59 }
 0x10c   : > { %1813 = vmatprep.subr.bf16.mxu1 %v1812_v33  ;;  %v349_v16 = vrot.slane %v301_v3, %v2791_v61  ;;  %v357_v17 = vrot.slane %v301_v3, %v2793_v62  ;;  %v369_v28 = vrot.slane %v301_v3, %v2795_v63  ;;  %v365_v30 = vrot.slane %v301_v3, %v2800_v5  ;;  %v408_v3 = vld [vmem:[#allocation5 + $0xd0] sm:$0xff] }
 0x10e   : > { %1871 = vmatpush1.bf16.msra.mxu0 %v1870_v19  ;;  %v328_v19 = vrot.slane %v300_v60, %v2800_v5 }
 0x10f   : > { %1873 = vmatprep.subr.bf16.mxu0 %v1872_v24  ;;  %1815 = vmatpush1.bf16.msra.mxu1 %v1814_v44  ;;  %v772_v24 = vld [vmem:[#allocation5 + $0xc30] sm:$0xff] }
 0x110   : > { %1945 = vmatprep.subr.bf16.mxu1 %v1944_v49  ;;  %v1882_v34 = vpack.c.bf16 %v772_v24, %v766_v18  ;;  %v439_v24 = vld [vmem:[#allocation5 + $0x1c8] sm:$0xff] }
 0x112   : > { %1875 = vmatpush1.bf16.msra.mxu0 %v1874_v32 }
 0x113   : > { %1877 = vmatprep.subr.bf16.mxu0 %v1876_v37  ;;  %v403_v37 = vld [vmem:[#allocation5 + $0xa8] sm:$0xff] }
 0x116   : > { %1879 = vmatpush1.bf16.msra.mxu0 %v1878_v0  ;;  %v778_v0 = vld [vmem:[#allocation5 + $0xc60] sm:$0xff] }
 0x117   : > { %1881 = vmatprep.subr.bf16.mxu0 %v1880_v47  ;;  %v791_v47 = vld [vmem:[#allocation5 + $0xcc8] sm:$0xff] }
 0x18b   : > { %v289_v6 = vpop.xlane.xlu0 %288 }
 0x18c   : > { %v290_v50 = vmul.f32 0.0013037809, %v289_v6  ;;  %v1948_v6 = vpack.c.bf16 %v403_v37, %v397_v36  ;;  %v832_v36 = vld [vmem:[#allocation5 + $0xe10] sm:$0xff] }
 0x18e   : > { %2403 = vrsqrt.f32 %v290_v50  ;;  %vm293_vm0 = vcmp.eq.f32.partialorder %v290_v50, inf  ;;  %v296_v53 = vand.u32 2147483648, %v290_v50  ;;  %vm295_vm1 = vcmp.eq.f32.partialorder %v290_v50, 0.0 }
 0x198   : > { %v2404_v51 = vpop.eup %2403 }
 0x199   : > { %v292_v52 = vmul.f32 %v2404_v51, %v290_v50  ;;  %v409_v51 = vld [vmem:[#allocation5 + $0xd8] sm:$0xff] }
 0x19b   : > { %v294_v54 = vsel %vm293_vm0, %v290_v50, %v292_v52  ;;  %v797_v50 = vld [vmem:[#allocation5 + $0xcf8] sm:$0xff]  ;;  %v415_v52 = vld [vmem:[#allocation5 + $0x108] sm:$0xff] }
 0x19c   : > { %v297_v55 = vsel %vm295_vm1, %v296_v53, %v294_v54  ;;  %v1886_v54 = vpack.c.bf16 %v784_v1, %v778_v0  ;;  %v1888_v57 = vpack.c.bf16 %v797_v50, %v791_v47  ;;  %v1952_v60 = vpack.c.bf16 %v415_v52, %v409_v51  ;;  %v444_v0 = vld [vmem:[#allocation5 + $0x1f0] sm:$0xff]  ;;  %v450_v1 = vld [vmem:[#allocation5 + $0x220] sm:$0xff]  ;;  %v457_v47 = vld [vmem:[#allocation5 + $0x258] sm:$0xff] }
 0x19d   : > { %v298_v56 = vadd.f32 1e-06, %v297_v55  ;;  %v790_v55 = vld [vmem:[#allocation5 + $0xcc0] sm:$0xff]  ;;  %v1966_v50 = vpack.c.bf16 %v450_v1, %v444_v0  ;;  %v844_v52 = vld [vmem:[#allocation5 + $0xe70] sm:$0xff]  ;;  %v505_v0 = vld [vmem:[#allocation5 + $0x3d8] sm:$0xff] }
 0x19e   : > { %v838_v51 = vld [vmem:[#allocation5 + $0xe40] sm:$0xff]  ;;  %v511_v1 = vld [vmem:[#allocation5 + $0x408] sm:$0xff] }
 0x19f   : > { %2405 = vrcp.f32 %v298_v56  ;;  %v796_v56 = vld [vmem:[#allocation5 + $0xcf0] sm:$0xff] }
 0x1a9   : > { %v2406_v14 = vpop.eup %2405 }
 0x1aa   : > { %v303_v20 = vmul.f32 %v2406_v14, %v2758_v40  ;;  %v305_v21 = vmul.f32 %v2406_v14, %v2764_v42  ;;  %v302_v22 = vmul.f32 %v2406_v14, %v2755_v39  ;;  %v304_v23 = vmul.f32 %v2406_v14, %v2761_v41  ;;  %v779_v42 = vld [vmem:[#allocation5 + $0xc68] sm:$0xff]  ;;  %v785_v41 = vld [vmem:[#allocation5 + $0xc98] sm:$0xff] }
 0x1ab   : > { %v307_v27 = vmul.f32 %v2406_v14, %v2776_v46  ;;  %v306_v29 = vmul.f32 %v2406_v14, %v2771_v45  ;;  %v1946_v39 = vpack.c.bf16 %v390_v26, %v384_v25  ;;  %v1884_v49 = vpack.c.bf16 %v785_v41, %v779_v42  ;;  %v445_v42 = vld [vmem:[#allocation5 + $0x1f8] sm:$0xff]  ;;  %v826_v41 = vld [vmem:[#allocation5 + $0xde0] sm:$0xff] }
 0x1ac   : > { %v340_v31 = vmul.f32 %v316_v7, %v303_v20  ;;  %v342_v32 = vmul.f32 %v324_v9, %v305_v21  ;;  %v339_v40 = vmul.f32 %v312_v11, %v302_v22  ;;  %v341_v33 = vmul.f32 %v320_v12, %v304_v23  ;;  %v414_v7 = vld [vmem:[#allocation5 + $0x100] sm:$0xff]  ;;  %v803_v9 = vld [vmem:[#allocation5 + $0xd28] sm:$0xff]  ;;  %v421_v11 = vld [vmem:[#allocation5 + $0x138] sm:$0xff] }
 0x1ad   : > { %v344_v35 = vmul.f32 %v332_v13, %v307_v27  ;;  %v343_v38 = vmul.f32 %v328_v19, %v306_v29  ;;  %v427_v12 = vld [vmem:[#allocation5 + $0x168] sm:$0xff]  ;;  %v1890_v13 = vpack.c.bf16 %v796_v56, %v790_v55  ;;  %v1954_v14 = vpack.c.bf16 %v414_v7, %v408_v3  ;;  %v420_v19 = vld [vmem:[#allocation5 + $0x130] sm:$0xff]  ;;  %v426_v20 = vld [vmem:[#allocation5 + $0x160] sm:$0xff] }
 0x1ae   : > { %v2820_v43 = vadd.f32 %v353_v10, %v340_v31  ;;  %v2822_v46 = vadd.f32 %v361_v15, %v342_v32  ;;  %v2824_v44 = vadd.f32 %v349_v16, %v339_v40  ;;  %v2826_v45 = vadd.f32 %v357_v17, %v341_v33  ;;  %v809_v10 = vld [vmem:[#allocation5 + $0xd58] sm:$0xff]  ;;  %v802_v15 = vld [vmem:[#allocation5 + $0xd20] sm:$0xff]  ;;  %v808_v16 = vld [vmem:[#allocation5 + $0xd50] sm:$0xff] }
 0x1af   : > { %v2828_v48 = vadd.f32 %v365_v30, %v343_v38  ;;  %v2834_v53 = vadd.f32 %v369_v28, %v344_v35  ;;  %v1892_v17 = vpack.c.bf16 %v809_v10, %v803_v9  ;;  %v1956_v18 = vpack.c.bf16 %v427_v12, %v421_v11  ;;  %v815_v21 = vld [vmem:[#allocation5 + $0xd88] sm:$0xff]  ;;  %v821_v22 = vld [vmem:[#allocation5 + $0xdb8] sm:$0xff]  ;;  %v814_v27 = vld [vmem:[#allocation5 + $0xd80] sm:$0xff] }
 0x1b0   : > { %1022 = vmatprep.mubr.f32.mxu1 %v2820_v43  ;;  %1093 = vmatprep.mubr.f32.mxu0 %v2822_v46  ;;  %v433_v23 = vld [vmem:[#allocation5 + $0x198] sm:$0xff]  ;;  %v1894_v25 = vpack.c.bf16 %v808_v16, %v802_v15  ;;  %v1958_v26 = vpack.c.bf16 %v426_v20, %v420_v19  ;;  %v820_v28 = vld [vmem:[#allocation5 + $0xdb0] sm:$0xff]  ;;  %v1896_v29 = vpack.c.bf16 %v821_v22, %v815_v21  ;;  %v438_v32 = vld [vmem:[#allocation5 + $0x1c0] sm:$0xff] }
 0x1b1   : > { %1023 = vmatmul.mubr.f32.vlgmr.msra.gmra.mrb[0].mxu1 %v2824_v44  ;;  %1094 = vmatmul.mubr.f32.vlgmr.msra.gmra.mrb[0].mxu0 %v2826_v45  ;;  %v1960_v30 = vpack.c.bf16 %v439_v24, %v433_v23  ;;  %v432_v31 = vld [vmem:[#allocation5 + $0x190] sm:$0xff]  ;;  %v827_v40 = vld [vmem:[#allocation5 + $0xde8] sm:$0xff]  ;;  %v833_v33 = vld [vmem:[#allocation5 + $0xe18] sm:$0xff]  ;;  %v1906_v9 = vpack.c.bf16 %v844_v52, %v838_v51 }
 0x1b2   : > { %1883 = vmatpush1.bf16.msra.mxu0 %v1882_v34  ;;  %1947 = vmatpush1.bf16.msra.mxu1 %v1946_v39  ;;  %v451_v34 = vld [vmem:[#allocation5 + $0x228] sm:$0xff]  ;;  %v1898_v39 = vpack.c.bf16 %v820_v28, %v814_v27  ;;  %v1962_v35 = vpack.c.bf16 %v438_v32, %v432_v31  ;;  %v1900_v37 = vpack.c.bf16 %v833_v33, %v827_v40  ;;  %v456_v55 = vld [vmem:[#allocation5 + $0x250] sm:$0xff]  ;;  %v462_v56 = vld [vmem:[#allocation5 + $0x280] sm:$0xff] }
 0x1b3   : > { %1164 = vmatprep.mubr.f32.mxu0 %v2834_v53  ;;  %1235 = vmatprep.mubr.f32.mxu1 %v2820_v43  ;;  %v1964_v38 = vpack.c.bf16 %v451_v34, %v445_v42  ;;  %v469_v3 = vld [vmem:[#allocation5 + $0x2b8] sm:$0xff]  ;;  %v475_v7 = vld [vmem:[#allocation5 + $0x2e8] sm:$0xff]  ;;  %v1970_v10 = vpack.c.bf16 %v462_v56, %v456_v55  ;;  %v850_v11 = vld [vmem:[#allocation5 + $0xea0] sm:$0xff] }
 0x1b4   : > { %1885 = vmatprep.subr.bf16.mxu0 %v1884_v49  ;;  %1949 = vmatprep.subr.bf16.mxu1 %v1948_v6  ;;  %v463_v49 = vld [vmem:[#allocation5 + $0x288] sm:$0xff]  ;;  %v1902_v6 = vpack.c.bf16 %v832_v36, %v826_v41  ;;  %v856_v12 = vld [vmem:[#allocation5 + $0xed0] sm:$0xff]  ;;  %v474_v16 = vld [vmem:[#allocation5 + $0x2e0] sm:$0xff] }
 0x1b5   : > { %v468_v15 = vld [vmem:[#allocation5 + $0x2b0] sm:$0xff]  ;;  %v481_v19 = vld [vmem:[#allocation5 + $0x318] sm:$0xff]  ;;  %v487_v20 = vld [vmem:[#allocation5 + $0x348] sm:$0xff]  ;;  %v1910_v21 = vpack.c.bf16 %v856_v12, %v850_v11 }
 0x1b6   : > { %1887 = vmatpush1.bf16.msra.mxu0 %v1886_v54  ;;  %1951 = vmatpush1.bf16.msra.mxu1 %v1950_v8  ;;  %v1904_v54 = vpack.c.bf16 %v845_v4, %v839_v2  ;;  %v1968_v8 = vpack.c.bf16 %v463_v49, %v457_v47  ;;  %v1974_v22 = vpack.c.bf16 %v474_v16, %v468_v15  ;;  %v862_v23 = vld [vmem:[#allocation5 + $0xf00] sm:$0xff]  ;;  %v868_v24 = vld [vmem:[#allocation5 + $0xf30] sm:$0xff]  ;;  %v493_v31 = vld [vmem:[#allocation5 + $0x378] sm:$0xff] }
 0x1b7   : > { %1889 = vmatprep.subr.bf16.mxu0 %v1888_v57  ;;  %1953 = vmatprep.subr.bf16.mxu1 %v1952_v60  ;;  %v851_v57 = vld [vmem:[#allocation5 + $0xea8] sm:$0xff]  ;;  %v857_v60 = vld [vmem:[#allocation5 + $0xed8] sm:$0xff]  ;;  %v480_v27 = vld [vmem:[#allocation5 + $0x310] sm:$0xff]  ;;  %v1914_v40 = vpack.c.bf16 %v868_v24, %v862_v23 }
 0x1b8   : > { %v486_v28 = vld [vmem:[#allocation5 + $0x340] sm:$0xff]  ;;  %v499_v32 = vld [vmem:[#allocation5 + $0x3a8] sm:$0xff]  ;;  %v880_v34 = vld [vmem:[#allocation5 + $0xf90] sm:$0xff] }
 0x1b9   : > { %v1978_v33 = vpack.c.bf16 %v486_v28, %v480_v27  ;;  %v874_v42 = vld [vmem:[#allocation5 + $0xf60] sm:$0xff]  ;;  %v492_v41 = vld [vmem:[#allocation5 + $0x370] sm:$0xff]  ;;  %v517_v55 = vld [vmem:[#allocation5 + $0x438] sm:$0xff] }
 0x1ba   : > { %1891 = vmatpush1.bf16.msra.mxu0 %v1890_v13  ;;  %1955 = vmatpush1.bf16.msra.mxu1 %v1954_v14  ;;  %v1908_v13 = vpack.c.bf16 %v857_v60, %v851_v57  ;;  %v1972_v14 = vpack.c.bf16 %v475_v7, %v469_v3  ;;  %v498_v36 = vld [vmem:[#allocation5 + $0x3a0] sm:$0xff]  ;;  %v1918_v2 = vpack.c.bf16 %v880_v34, %v874_v42  ;;  %v892_v49 = vld [vmem:[#allocation5 + $0xff0] sm:$0xff]  ;;  %v523_v56 = vld [vmem:[#allocation5 + $0x468] sm:$0xff] }
 0x1bb   : > { %1893 = vmatprep.subr.bf16.mxu0 %v1892_v17  ;;  %1957 = vmatprep.subr.bf16.mxu1 %v1956_v18  ;;  %v863_v17 = vld [vmem:[#allocation5 + $0xf08] sm:$0xff]  ;;  %v869_v18 = vld [vmem:[#allocation5 + $0xf38] sm:$0xff]  ;;  %v1982_v4 = vpack.c.bf16 %v498_v36, %v492_v41  ;;  %v886_v47 = vld [vmem:[#allocation5 + $0xfc0] sm:$0xff] }
 0x1bc   : > { %v504_v51 = vld [vmem:[#allocation5 + $0x3d0] sm:$0xff]  ;;  %v510_v52 = vld [vmem:[#allocation5 + $0x400] sm:$0xff]  ;;  %v1922_v57 = vpack.c.bf16 %v892_v49, %v886_v47  ;;  %v529_v15 = vld [vmem:[#allocation5 + $0x498] sm:$0xff] }
 0x1bd   : > { %v1986_v60 = vpack.c.bf16 %v510_v52, %v504_v51  ;;  %v898_v3 = vld [vmem:[#allocation5 + $0x1020] sm:$0xff]  ;;  %v904_v7 = vld [vmem:[#allocation5 + $0x1050] sm:$0xff]  ;;  %v535_v16 = vld [vmem:[#allocation5 + $0x4c8] sm:$0xff] }
 0x1be   : > { %1895 = vmatpush1.bf16.msra.mxu0 %v1894_v25  ;;  %1959 = vmatpush1.bf16.msra.mxu1 %v1958_v26  ;;  %v1912_v25 = vpack.c.bf16 %v869_v18, %v863_v17  ;;  %v1976_v26 = vpack.c.bf16 %v487_v20, %v481_v19  ;;  %v516_v11 = vld [vmem:[#allocation5 + $0x430] sm:$0xff]  ;;  %v522_v12 = vld [vmem:[#allocation5 + $0x460] sm:$0xff]  ;;  %v1926_v17 = vpack.c.bf16 %v904_v7, %v898_v3  ;;  %v541_v27 = vld [vmem:[#allocation5 + $0x4f8] sm:$0xff] }
 0x1bf   : > { %1897 = vmatprep.subr.bf16.mxu0 %v1896_v29  ;;  %1961 = vmatprep.subr.bf16.mxu1 %v1960_v30  ;;  %v875_v29 = vld [vmem:[#allocation5 + $0xf68] sm:$0xff]  ;;  %v881_v30 = vld [vmem:[#allocation5 + $0xf98] sm:$0xff]  ;;  %v1990_v18 = vpack.c.bf16 %v522_v12, %v516_v11  ;;  %v910_v19 = vld [vmem:[#allocation5 + $0x1080] sm:$0xff] }
 0x1c0   : > { %v916_v20 = vld [vmem:[#allocation5 + $0x10b0] sm:$0xff]  ;;  %v534_v24 = vld [vmem:[#allocation5 + $0x4c0] sm:$0xff]  ;;  %v547_v28 = vld [vmem:[#allocation5 + $0x528] sm:$0xff] }
 0x1c1   : > { %v528_v23 = vld [vmem:[#allocation5 + $0x490] sm:$0xff]  ;;  %v546_v34 = vld [vmem:[#allocation5 + $0x520] sm:$0xff]  ;;  %v553_v41 = vld [vmem:[#allocation5 + $0x558] sm:$0xff] }
 0x1c2   : > { %1899 = vmatpush1.bf16.msra.mxu0 %v1898_v39  ;;  %1963 = vmatpush1.bf16.msra.mxu1 %v1962_v35  ;;  %v1916_v39 = vpack.c.bf16 %v881_v30, %v875_v29  ;;  %v1980_v35 = vpack.c.bf16 %v499_v32, %v493_v31  ;;  %v1930_v29 = vpack.c.bf16 %v916_v20, %v910_v19  ;;  %v922_v31 = vld [vmem:[#allocation5 + $0x10e0] sm:$0xff]  ;;  %v928_v32 = vld [vmem:[#allocation5 + $0x1110] sm:$0xff]  ;;  %v559_v36 = vld [vmem:[#allocation5 + $0x588] sm:$0xff] }
 0x1c3   : > { %1901 = vmatprep.subr.bf16.mxu0 %v1900_v37  ;;  %1965 = vmatprep.subr.bf16.mxu1 %v1964_v38  ;;  %v887_v37 = vld [vmem:[#allocation5 + $0xfc8] sm:$0xff]  ;;  %v893_v38 = vld [vmem:[#allocation5 + $0xff8] sm:$0xff]  ;;  %v1994_v30 = vpack.c.bf16 %v534_v24, %v528_v23  ;;  %v540_v42 = vld [vmem:[#allocation5 + $0x4f0] sm:$0xff] }
 0x1c4   : > { %v552_v47 = vld [vmem:[#allocation5 + $0x550] sm:$0xff]  ;;  %v558_v49 = vld [vmem:[#allocation5 + $0x580] sm:$0xff]  ;;  %v565_v51 = vld [vmem:[#allocation5 + $0x5b8] sm:$0xff] }
 0x1c5   : > { %v571_v52 = vld [vmem:[#allocation5 + $0x5e8] sm:$0xff]  ;;  %v564_v3 = vld [vmem:[#allocation5 + $0x5b0] sm:$0xff]  ;;  %v570_v7 = vld [vmem:[#allocation5 + $0x5e0] sm:$0xff] }
 0x1c6   : > { %1903 = vmatpush1.bf16.msra.mxu0 %v1902_v6  ;;  %1967 = vmatpush1.bf16.msra.mxu1 %v1966_v50  ;;  %v1920_v6 = vpack.c.bf16 %v893_v38, %v887_v37  ;;  %v1984_v50 = vpack.c.bf16 %v511_v1, %v505_v0  ;;  %v1934_v37 = vpack.c.bf16 %v928_v32, %v922_v31  ;;  %v934_v0 = vld [vmem:[#allocation5 + $0x1140] sm:$0xff]  ;;  %v940_v1 = vld [vmem:[#allocation5 + $0x1170] sm:$0xff]  ;;  %v387_v11 = vld [vmem:[#allocation5 + $0x28] sm:$0xff] }
 0x1c7   : > { %1905 = vmatprep.subr.bf16.mxu0 %v1904_v54  ;;  %1969 = vmatprep.subr.bf16.mxu1 %v1968_v8  ;;  %v899_v54 = vld [vmem:[#allocation5 + $0x1028] sm:$0xff]  ;;  %v905_v8 = vld [vmem:[#allocation5 + $0x1058] sm:$0xff]  ;;  %v1998_v38 = vpack.c.bf16 %v546_v34, %v540_v42  ;;  %v386_v19 = vld [vmem:[#allocation5 + $0x20] sm:$0xff] }
 0x1c8   : > { %v393_v12 = vld [vmem:[#allocation5 + $0x58] sm:$0xff]  ;;  %v392_v20 = vld [vmem:[#allocation5 + $0x50] sm:$0xff]  ;;  %v399_v23 = vld [vmem:[#allocation5 + $0x88] sm:$0xff] }
 0x1c9   : > { %v405_v24 = vld [vmem:[#allocation5 + $0xb8] sm:$0xff]  ;;  %v404_v32 = vld [vmem:[#allocation5 + $0xb0] sm:$0xff]  ;;  %v411_v42 = vld [vmem:[#allocation5 + $0xe8] sm:$0xff] }
 0x1ca   : > { %1907 = vmatpush1.bf16.msra.mxu0 %v1906_v9  ;;  %1971 = vmatpush1.bf16.msra.mxu1 %v1970_v10  ;;  %v1924_v9 = vpack.c.bf16 %v905_v8, %v899_v54  ;;  %v1988_v10 = vpack.c.bf16 %v523_v56, %v517_v55  ;;  %v1938_v54 = vpack.c.bf16 %v940_v1, %v934_v0  ;;  %v946_v55 = vld [vmem:[#allocation5 + $0x11a0] sm:$0xff]  ;;  %v952_v56 = vld [vmem:[#allocation5 + $0x11d0] sm:$0xff]  ;;  %v417_v34 = vld [vmem:[#allocation5 + $0x118] sm:$0xff] }
 0x1cb   : > { %1909 = vmatprep.subr.bf16.mxu0 %v1908_v13  ;;  %1973 = vmatprep.subr.bf16.mxu1 %v1972_v14  ;;  %v911_v13 = vld [vmem:[#allocation5 + $0x1088] sm:$0xff]  ;;  %v917_v14 = vld [vmem:[#allocation5 + $0x10b8] sm:$0xff]  ;;  %v2002_v8 = vpack.c.bf16 %v558_v49, %v552_v47  ;;  %v2140_v31 = vpack.c.bf16 %v405_v24, %v399_v23  ;;  %v2144_v0 = vpack.c.bf16 %v417_v34, %v411_v42  ;;  %v416_v1 = vld [vmem:[#allocation5 + $0x110] sm:$0xff] }
 0x1cc   : > { %v423_v47 = vld [vmem:[#allocation5 + $0x148] sm:$0xff]  ;;  %v429_v49 = vld [vmem:[#allocation5 + $0x178] sm:$0xff]  ;;  %v636_v23 = vld [vmem:[#allocation5 + $0x7f0] sm:$0xff] }
 0x1cd   : > { %v642_v24 = vld [vmem:[#allocation5 + $0x820] sm:$0xff]  ;;  %v648_v42 = vld [vmem:[#allocation5 + $0x850] sm:$0xff] }
 0x1ce   : > { %1911 = vmatpush1.bf16.msra.mxu0 %v1910_v21  ;;  %1975 = vmatpush1.bf16.msra.mxu1 %v1974_v22  ;;  %v1928_v21 = vpack.c.bf16 %v917_v14, %v911_v13  ;;  %v1992_v22 = vpack.c.bf16 %v535_v16, %v529_v15  ;;  %v1942_v13 = vpack.c.bf16 %v952_v56, %v946_v55  ;;  %v428_v55 = vld [vmem:[#allocation5 + $0x170] sm:$0xff]  ;;  %v625_v56 = vld [vmem:[#allocation5 + $0x798] sm:$0xff]  ;;  %v654_v34 = vld [vmem:[#allocation5 + $0x880] sm:$0xff] }
 0x1cf   : > { %1913 = vmatprep.subr.bf16.mxu0 %v1912_v25  ;;  %1977 = vmatprep.subr.bf16.mxu1 %v1976_v26  ;;  %v923_v25 = vld [vmem:[#allocation5 + $0x10e8] sm:$0xff]  ;;  %v929_v26 = vld [vmem:[#allocation5 + $0x1118] sm:$0xff]  ;;  %v2006_v14 = vpack.c.bf16 %v570_v7, %v564_v3  ;;  %v2136_v16 = vpack.c.bf16 %v393_v12, %v387_v11  ;;  %v624_v11 = vld [vmem:[#allocation5 + $0x790] sm:$0xff] }
 0x1d0   : > { %v441_v3 = vld [vmem:[#allocation5 + $0x1d8] sm:$0xff]  ;;  %v630_v12 = vld [vmem:[#allocation5 + $0x7c0] sm:$0xff] }
 0x1d2   : > { %1915 = vmatpush1.bf16.msra.mxu0 %v1914_v40  ;;  %1979 = vmatpush1.bf16.msra.mxu1 %v1978_v33  ;;  %v1932_v40 = vpack.c.bf16 %v929_v26, %v923_v25  ;;  %v1996_v33 = vpack.c.bf16 %v547_v28, %v541_v27  ;;  %v2138_v26 = vpack.c.bf16 %v392_v20, %v386_v19  ;;  %v588_v27 = vld [vmem:[#allocation5 + $0x670] sm:$0xff]  ;;  %v594_v28 = vld [vmem:[#allocation5 + $0x6a0] sm:$0xff]  ;;  %v453_v19 = vld [vmem:[#allocation5 + $0x238] sm:$0xff] }
 0x1d3   : > { %1917 = vmatprep.subr.bf16.mxu0 %v1916_v39  ;;  %1981 = vmatprep.subr.bf16.mxu1 %v1980_v35  ;;  %v935_v39 = vld [vmem:[#allocation5 + $0x1148] sm:$0xff]  ;;  %v941_v35 = vld [vmem:[#allocation5 + $0x1178] sm:$0xff]  ;;  %v2026_v20 = vpack.c.bf16 %v630_v12, %v624_v11 }
 0x1d4   : > { %v685_v11 = vld [vmem:[#allocation5 + $0x978] sm:$0xff]  ;;  %v691_v12 = vld [vmem:[#allocation5 + $0x9a8] sm:$0xff] }
 0x1d6   : > { %1919 = vmatpush1.bf16.msra.mxu0 %v1918_v2  ;;  %1983 = vmatpush1.bf16.msra.mxu1 %v1982_v4  ;;  %v1936_v2 = vpack.c.bf16 %v941_v35, %v935_v39  ;;  %v2000_v4 = vpack.c.bf16 %v559_v36, %v553_v41  ;;  %v2014_v39 = vpack.c.bf16 %v594_v28, %v588_v27  ;;  %v600_v36 = vld [vmem:[#allocation5 + $0x6d0] sm:$0xff]  ;;  %v649_v28 = vld [vmem:[#allocation5 + $0x858] sm:$0xff] }
 0x1d7   : > { %1921 = vmatprep.subr.bf16.mxu0 %v1920_v6  ;;  %1985 = vmatprep.subr.bf16.mxu1 %v1984_v50  ;;  %v947_v6 = vld [vmem:[#allocation5 + $0x11a8] sm:$0xff]  ;;  %v953_v50 = vld [vmem:[#allocation5 + $0x11d8] sm:$0xff]  ;;  %v452_v27 = vld [vmem:[#allocation5 + $0x230] sm:$0xff] }
 0x1da   : > { %1923 = vmatpush1.bf16.msra.mxu0 %v1922_v57  ;;  %1987 = vmatpush1.bf16.msra.mxu1 %v1986_v60  ;;  %v1940_v57 = vpack.c.bf16 %v953_v50, %v947_v6  ;;  %v2004_v60 = vpack.c.bf16 %v571_v52, %v565_v51  ;;  %v618_v52 = vld [vmem:[#allocation5 + $0x760] sm:$0xff] }
 0x1db   : > { %1925 = vmatprep.subr.bf16.mxu0 %v1924_v9  ;;  %1989 = vmatprep.subr.bf16.mxu1 %v1988_v10  ;;  %v577_v9 = vld [vmem:[#allocation5 + $0x618] sm:$0xff]  ;;  %v583_v10 = vld [vmem:[#allocation5 + $0x648] sm:$0xff] }
 0x1dc   : > { %v2008_v15 = vpack.c.bf16 %v583_v10, %v577_v9 }
 0x1de   : > { %1927 = vmatpush1.bf16.msra.mxu0 %v1926_v17  ;;  %1991 = vmatpush1.bf16.msra.mxu1 %v1990_v18  ;;  %v576_v17 = vld [vmem:[#allocation5 + $0x610] sm:$0xff]  ;;  %v582_v18 = vld [vmem:[#allocation5 + $0x640] sm:$0xff] }
 0x1df   : > { %1929 = vmatprep.subr.bf16.mxu0 %v1928_v21  ;;  %1993 = vmatprep.subr.bf16.mxu1 %v1992_v22  ;;  %v589_v21 = vld [vmem:[#allocation5 + $0x678] sm:$0xff]  ;;  %v595_v22 = vld [vmem:[#allocation5 + $0x6a8] sm:$0xff]  ;;  %v2010_v25 = vpack.c.bf16 %v582_v18, %v576_v17 }
 0x1e0   : > { %v643_v17 = vld [vmem:[#allocation5 + $0x828] sm:$0xff] }
 0x1e1   : > { %v447_v18 = vld [vmem:[#allocation5 + $0x208] sm:$0xff] }
 0x1e2   : > { %1931 = vmatpush1.bf16.msra.mxu0 %v1930_v29  ;;  %1995 = vmatpush1.bf16.msra.mxu1 %v1994_v30  ;;  %v398_v29 = vld [vmem:[#allocation5 + $0x80] sm:$0xff]  ;;  %v2012_v30 = vpack.c.bf16 %v595_v22, %v589_v21 }
 0x1e3   : > { %1933 = vmatprep.subr.bf16.mxu0 %v1932_v40  ;;  %1997 = vmatprep.subr.bf16.mxu1 %v1996_v33  ;;  %v601_v40 = vld [vmem:[#allocation5 + $0x6d8] sm:$0xff]  ;;  %v607_v33 = vld [vmem:[#allocation5 + $0x708] sm:$0xff]  ;;  %v2142_v35 = vpack.c.bf16 %v404_v32, %v398_v29  ;;  %v2030_v32 = vpack.c.bf16 %v642_v24, %v636_v23 }
 0x1e4   : > { %v2016_v41 = vpack.c.bf16 %v607_v33, %v601_v40  ;;  %v655_v29 = vld [vmem:[#allocation5 + $0x888] sm:$0xff]  ;;  %v697_v23 = vld [vmem:[#allocation5 + $0x9d8] sm:$0xff] }
 0x1e5   : > { %v2032_v33 = vpack.c.bf16 %v655_v29, %v649_v28  ;;  %v703_v24 = vld [vmem:[#allocation5 + $0xa08] sm:$0xff] }
 0x1e6   : > { %1935 = vmatpush1.bf16.msra.mxu0 %v1934_v37  ;;  %1999 = vmatpush1.bf16.msra.mxu1 %v1998_v38  ;;  %v606_v37 = vld [vmem:[#allocation5 + $0x700] sm:$0xff]  ;;  %v2048_v29 = vpack.c.bf16 %v703_v24, %v697_v23 }
 0x1e7   : > { %1937 = vmatprep.subr.bf16.mxu0 %v1936_v2  ;;  %2001 = vmatprep.subr.bf16.mxu1 %v2000_v4  ;;  %v410_v38 = vld [vmem:[#allocation5 + $0xe0] sm:$0xff]  ;;  %v613_v2 = vld [vmem:[#allocation5 + $0x738] sm:$0xff]  ;;  %v619_v4 = vld [vmem:[#allocation5 + $0x768] sm:$0xff]  ;;  %v2018_v6 = vpack.c.bf16 %v606_v37, %v600_v36 }
 0x1e8   : > { %v2146_v50 = vpack.c.bf16 %v416_v1, %v410_v38  ;;  %v2020_v51 = vpack.c.bf16 %v619_v4, %v613_v2  ;;  %v661_v36 = vld [vmem:[#allocation5 + $0x8b8] sm:$0xff]  ;;  %v667_v37 = vld [vmem:[#allocation5 + $0x8e8] sm:$0xff]  ;;  %v2034_v1 = vpack.c.bf16 %v654_v34, %v648_v42 }
 0x1e9   : > { %v471_v38 = vld [vmem:[#allocation5 + $0x2c8] sm:$0xff]  ;;  %v2036_v4 = vpack.c.bf16 %v667_v37, %v661_v36  ;;  %v709_v42 = vld [vmem:[#allocation5 + $0xa38] sm:$0xff] }
 0x1ea   : > { %1939 = vmatpush1.bf16.msra.mxu0 %v1938_v54  ;;  %2003 = vmatpush1.bf16.msra.mxu1 %v2002_v8  ;;  %v422_v54 = vld [vmem:[#allocation5 + $0x140] sm:$0xff]  ;;  %v2148_v8 = vpack.c.bf16 %v429_v49, %v423_v47  ;;  %v660_v47 = vld [vmem:[#allocation5 + $0x8b0] sm:$0xff]  ;;  %v715_v34 = vld [vmem:[#allocation5 + $0xa68] sm:$0xff] }
 0x1eb   : > { %1941 = vmatprep.subr.bf16.mxu0 %v1940_v57  ;;  %2005 = vmatprep.subr.bf16.mxu1 %v2004_v60  ;;  %v631_v57 = vld [vmem:[#allocation5 + $0x7c8] sm:$0xff]  ;;  %v2150_v9 = vpack.c.bf16 %v428_v55, %v422_v54  ;;  %v666_v49 = vld [vmem:[#allocation5 + $0x8e0] sm:$0xff]  ;;  %v2052_v37 = vpack.c.bf16 %v715_v34, %v709_v42 }
 0x1ec   : > { %v435_v60 = vld [vmem:[#allocation5 + $0x1a8] sm:$0xff]  ;;  %v2024_v10 = vpack.c.bf16 %v631_v57, %v625_v56  ;;  %v2038_v55 = vpack.c.bf16 %v666_v49, %v660_v47  ;;  %v721_v47 = vld [vmem:[#allocation5 + $0xa98] sm:$0xff] }
 0x1ed   : > { %v483_v54 = vld [vmem:[#allocation5 + $0x328] sm:$0xff] }
 0x1ee   : > { %1943 = vmatpush1.bf16.msra.mxu0 %v1942_v13  ;;  %2007 = vmatpush1.bf16.msra.mxu1 %v2006_v14  ;;  %v434_v13 = vld [vmem:[#allocation5 + $0x1a0] sm:$0xff]  ;;  %v2152_v14 = vpack.c.bf16 %v441_v3, %v435_v60  ;;  %v672_v60 = vld [vmem:[#allocation5 + $0x910] sm:$0xff]  ;;  %v727_v49 = vld [vmem:[#allocation5 + $0xac8] sm:$0xff] }
 0x1ef   : > { %2009 = vmatprep.subr.bf16.mxu1 %v2008_v15  ;;  %2137 = vmatprep.subr.bf16.mxu0 %v2136_v16  ;;  %v440_v15 = vld [vmem:[#allocation5 + $0x1d0] sm:$0xff]  ;;  %v637_v16 = vld [vmem:[#allocation5 + $0x7f8] sm:$0xff]  ;;  %v678_v3 = vld [vmem:[#allocation5 + $0x940] sm:$0xff] }
 0x1f0   : > { %v2154_v21 = vpack.c.bf16 %v440_v15, %v434_v13  ;;  %v2028_v22 = vpack.c.bf16 %v643_v17, %v637_v16  ;;  %v495_v13 = vld [vmem:[#allocation5 + $0x388] sm:$0xff]  ;;  %v2042_v15 = vpack.c.bf16 %v678_v3, %v672_v60  ;;  %v2044_v17 = vpack.c.bf16 %v691_v12, %v685_v11  ;;  %v733_v60 = vld [vmem:[#allocation5 + $0xaf8] sm:$0xff] }
 0x1f1   : > { %1165 = vmatmul.mubr.f32.vlgmr.msra.gmra.mrb[0].mxu0 %v2828_v48  ;;  %1236 = vmatmul.mubr.f32.vlgmr.msra.gmra.mrb[2].mxu1 %v2824_v44  ;;  %v739_v3 = vld [vmem:[#allocation5 + $0xb28] sm:$0xff] }
 0x1f2   : > { %2011 = vmatpush1.bf16.msra.mxu1 %v2010_v25  ;;  %1306 = vmatprep.mubr.f32.mxu1 %v2822_v46  ;;  %v446_v25 = vld [vmem:[#allocation5 + $0x200] sm:$0xff]  ;;  %v2060_v12 = vpack.c.bf16 %v739_v3, %v733_v60  ;;  %v780_v3 = vld [vmem:[#allocation5 + $0xc70] sm:$0xff] }
 0x1f3   : > { %2139 = vmatpush1.bf16.msra.mxu0 %v2138_v26  ;;  %1448 = vmatprep.mubr.f32.mxu0 %v2820_v43  ;;  %v612_v43 = vld [vmem:[#allocation5 + $0x730] sm:$0xff]  ;;  %v2156_v26 = vpack.c.bf16 %v453_v19, %v447_v18  ;;  %v2158_v40 = vpack.c.bf16 %v452_v27, %v446_v25  ;;  %v690_v19 = vld [vmem:[#allocation5 + $0x9a0] sm:$0xff]  ;;  %v507_v25 = vld [vmem:[#allocation5 + $0x3e8] sm:$0xff] }
 0x1f4   : > { %2013 = vmatprep.subr.bf16.mxu1 %v2012_v30  ;;  %2141 = vmatprep.subr.bf16.mxu0 %v2140_v31  ;;  %v2022_v7 = vpack.c.bf16 %v618_v52, %v612_v43  ;;  %v459_v30 = vld [vmem:[#allocation5 + $0x268] sm:$0xff]  ;;  %v465_v31 = vld [vmem:[#allocation5 + $0x298] sm:$0xff]  ;;  %v684_v18 = vld [vmem:[#allocation5 + $0x970] sm:$0xff] }
 0x1f5   : > { %v673_v43 = vld [vmem:[#allocation5 + $0x918] sm:$0xff]  ;;  %v679_v52 = vld [vmem:[#allocation5 + $0x948] sm:$0xff]  ;;  %v2046_v27 = vpack.c.bf16 %v690_v19, %v684_v18 }
 0x1f6   : > { %2015 = vmatpush1.bf16.msra.mxu1 %v2014_v39  ;;  %v458_v39 = vld [vmem:[#allocation5 + $0x260] sm:$0xff]  ;;  %v2040_v57 = vpack.c.bf16 %v679_v52, %v673_v43  ;;  %v2056_v52 = vpack.c.bf16 %v727_v49, %v721_v47  ;;  %v745_v18 = vld [vmem:[#allocation5 + $0xb58] sm:$0xff]  ;;  %v751_v19 = vld [vmem:[#allocation5 + $0xb88] sm:$0xff] }
 0x1f7   : > { %2143 = vmatpush1.bf16.msra.mxu0 %v2142_v35  ;;  %2017 = vmatprep.subr.bf16.mxu1 %v2016_v41  ;;  %v2160_v35 = vpack.c.bf16 %v465_v31, %v459_v30  ;;  %v464_v41 = vld [vmem:[#allocation5 + $0x290] sm:$0xff]  ;;  %v702_v31 = vld [vmem:[#allocation5 + $0xa00] sm:$0xff]  ;;  %v2064_v24 = vpack.c.bf16 %v751_v19, %v745_v18 }
 0x1f8   : > { %2145 = vmatprep.subr.bf16.mxu0 %v2144_v0  ;;  %v477_v0 = vld [vmem:[#allocation5 + $0x2f8] sm:$0xff]  ;;  %v2162_v2 = vpack.c.bf16 %v464_v41, %v458_v39  ;;  %v696_v30 = vld [vmem:[#allocation5 + $0x9d0] sm:$0xff]  ;;  %v519_v39 = vld [vmem:[#allocation5 + $0x448] sm:$0xff] }
 0x1f9   : > { %v2050_v41 = vpack.c.bf16 %v702_v31, %v696_v30  ;;  %v757_v30 = vld [vmem:[#allocation5 + $0xbb8] sm:$0xff]  ;;  %v763_v31 = vld [vmem:[#allocation5 + $0xbe8] sm:$0xff] }
 0x1fa   : > { %2019 = vmatpush1.bf16.msra.mxu1 %v2018_v6  ;;  %v470_v6 = vld [vmem:[#allocation5 + $0x2c0] sm:$0xff]  ;;  %v2068_v34 = vpack.c.bf16 %v763_v31, %v757_v30  ;;  %v804_v31 = vld [vmem:[#allocation5 + $0xd30] sm:$0xff] }
 0x1fb   : > { %2147 = vmatpush1.bf16.msra.mxu0 %v2146_v50  ;;  %2021 = vmatprep.subr.bf16.mxu1 %v2020_v51  ;;  %v2164_v50 = vpack.c.bf16 %v477_v0, %v471_v38  ;;  %v476_v51 = vld [vmem:[#allocation5 + $0x2f0] sm:$0xff]  ;;  %v714_v0 = vld [vmem:[#allocation5 + $0xa60] sm:$0xff] }
 0x1fc   : > { %2149 = vmatprep.subr.bf16.mxu0 %v2148_v8  ;;  %v489_v8 = vld [vmem:[#allocation5 + $0x358] sm:$0xff]  ;;  %v2166_v56 = vpack.c.bf16 %v476_v51, %v470_v6  ;;  %v708_v38 = vld [vmem:[#allocation5 + $0xa30] sm:$0xff]  ;;  %v531_v6 = vld [vmem:[#allocation5 + $0x4a8] sm:$0xff] }
 0x1fd   : > { %v2054_v51 = vpack.c.bf16 %v714_v0, %v708_v38  ;;  %v769_v38 = vld [vmem:[#allocation5 + $0xc18] sm:$0xff]  ;;  %v775_v0 = vld [vmem:[#allocation5 + $0xc48] sm:$0xff] }
 0x1fe   : > { %2023 = vmatpush1.bf16.msra.mxu1 %v2022_v7  ;;  %v482_v7 = vld [vmem:[#allocation5 + $0x320] sm:$0xff]  ;;  %v2072_v49 = vpack.c.bf16 %v775_v0, %v769_v38  ;;  %v816_v38 = vld [vmem:[#allocation5 + $0xd90] sm:$0xff] }
 0x1ff   : > { %2151 = vmatpush1.bf16.msra.mxu0 %v2150_v9  ;;  %2025 = vmatprep.subr.bf16.mxu1 %v2024_v10  ;;  %v2168_v9 = vpack.c.bf16 %v489_v8, %v483_v54  ;;  %v488_v10 = vld [vmem:[#allocation5 + $0x350] sm:$0xff]  ;;  %v726_v8 = vld [vmem:[#allocation5 + $0xac0] sm:$0xff] }
 0x200   : > { %2153 = vmatprep.subr.bf16.mxu0 %v2152_v14  ;;  %v501_v14 = vld [vmem:[#allocation5 + $0x3b8] sm:$0xff]  ;;  %v2170_v16 = vpack.c.bf16 %v488_v10, %v482_v7  ;;  %v720_v54 = vld [vmem:[#allocation5 + $0xa90] sm:$0xff]  ;;  %v543_v7 = vld [vmem:[#allocation5 + $0x508] sm:$0xff] }
 0x201   : > { %v2058_v10 = vpack.c.bf16 %v726_v8, %v720_v54  ;;  %v781_v54 = vld [vmem:[#allocation5 + $0xc78] sm:$0xff]  ;;  %v787_v8 = vld [vmem:[#allocation5 + $0xca8] sm:$0xff]  ;;  %v822_v0 = vld [vmem:[#allocation5 + $0xdc0] sm:$0xff] }
 0x202   : > { %2027 = vmatpush1.bf16.msra.mxu1 %v2026_v20  ;;  %v494_v20 = vld [vmem:[#allocation5 + $0x380] sm:$0xff] }
 0x203   : > { %2155 = vmatpush1.bf16.msra.mxu0 %v2154_v21  ;;  %2029 = vmatprep.subr.bf16.mxu1 %v2028_v22  ;;  %v2172_v21 = vpack.c.bf16 %v501_v14, %v495_v13  ;;  %v500_v22 = vld [vmem:[#allocation5 + $0x3b0] sm:$0xff]  ;;  %v738_v14 = vld [vmem:[#allocation5 + $0xb20] sm:$0xff] }
 0x204   : > { %2157 = vmatprep.subr.bf16.mxu0 %v2156_v26  ;;  %v513_v26 = vld [vmem:[#allocation5 + $0x418] sm:$0xff]  ;;  %v2174_v28 = vpack.c.bf16 %v500_v22, %v494_v20  ;;  %v732_v13 = vld [vmem:[#allocation5 + $0xaf0] sm:$0xff]  ;;  %v555_v20 = vld [vmem:[#allocation5 + $0x568] sm:$0xff] }
 0x205   : > { %v2062_v22 = vpack.c.bf16 %v738_v14, %v732_v13  ;;  %v799_v13 = vld [vmem:[#allocation5 + $0xd08] sm:$0xff] }
 0x206   : > { %2031 = vmatpush1.bf16.msra.mxu1 %v2030_v32  ;;  %v506_v32 = vld [vmem:[#allocation5 + $0x3e0] sm:$0xff] }
 0x207   : > { %2159 = vmatpush1.bf16.msra.mxu0 %v2158_v40  ;;  %2033 = vmatprep.subr.bf16.mxu1 %v2032_v33  ;;  %v2176_v40 = vpack.c.bf16 %v513_v26, %v507_v25  ;;  %v512_v33 = vld [vmem:[#allocation5 + $0x410] sm:$0xff]  ;;  %v750_v26 = vld [vmem:[#allocation5 + $0xb80] sm:$0xff] }
 0x208   : > { %2161 = vmatprep.subr.bf16.mxu0 %v2160_v35  ;;  %v525_v35 = vld [vmem:[#allocation5 + $0x478] sm:$0xff]  ;;  %v2178_v36 = vpack.c.bf16 %v512_v33, %v506_v32  ;;  %v744_v25 = vld [vmem:[#allocation5 + $0xb50] sm:$0xff]  ;;  %v567_v32 = vld [vmem:[#allocation5 + $0x5c8] sm:$0xff] }
 0x209   : > { %v2066_v33 = vpack.c.bf16 %v750_v26, %v744_v25  ;;  %v805_v25 = vld [vmem:[#allocation5 + $0xd38] sm:$0xff]  ;;  %v811_v26 = vld [vmem:[#allocation5 + $0xd68] sm:$0xff] }
 0x20a   : > { %2035 = vmatpush1.bf16.msra.mxu1 %v2034_v1  ;;  %v518_v1 = vld [vmem:[#allocation5 + $0x440] sm:$0xff]  ;;  %v2084_v30 = vpack.c.bf16 %v811_v26, %v805_v25  ;;  %v852_v25 = vld [vmem:[#allocation5 + $0xeb0] sm:$0xff] }
 0x20b   : > { %2163 = vmatpush1.bf16.msra.mxu0 %v2162_v2  ;;  %2037 = vmatprep.subr.bf16.mxu1 %v2036_v4  ;;  %v2180_v2 = vpack.c.bf16 %v525_v35, %v519_v39  ;;  %v524_v4 = vld [vmem:[#allocation5 + $0x470] sm:$0xff]  ;;  %v762_v35 = vld [vmem:[#allocation5 + $0xbe0] sm:$0xff] }
 0x20c   : > { %2165 = vmatprep.subr.bf16.mxu0 %v2164_v50  ;;  %v537_v50 = vld [vmem:[#allocation5 + $0x4d8] sm:$0xff]  ;;  %v2182_v43 = vpack.c.bf16 %v524_v4, %v518_v1  ;;  %v756_v39 = vld [vmem:[#allocation5 + $0xbb0] sm:$0xff]  ;;  %v579_v1 = vld [vmem:[#allocation5 + $0x628] sm:$0xff] }
 0x20d   : > { %v2070_v4 = vpack.c.bf16 %v762_v35, %v756_v39  ;;  %v627_v39 = vld [vmem:[#allocation5 + $0x7a8] sm:$0xff]  ;;  %v633_v35 = vld [vmem:[#allocation5 + $0x7d8] sm:$0xff]  ;;  %v858_v26 = vld [vmem:[#allocation5 + $0xee0] sm:$0xff] }
 0x20e   : > { %2039 = vmatpush1.bf16.msra.mxu1 %v2038_v55  ;;  %v530_v55 = vld [vmem:[#allocation5 + $0x4a0] sm:$0xff] }
 0x20f   : > { %2167 = vmatpush1.bf16.msra.mxu0 %v2166_v56  ;;  %2041 = vmatprep.subr.bf16.mxu1 %v2040_v57  ;;  %v2184_v56 = vpack.c.bf16 %v537_v50, %v531_v6  ;;  %v536_v57 = vld [vmem:[#allocation5 + $0x4d0] sm:$0xff]  ;;  %v774_v50 = vld [vmem:[#allocation5 + $0xc40] sm:$0xff] }
 0x210   : > { %2169 = vmatprep.subr.bf16.mxu0 %v2168_v9  ;;  %v549_v9 = vld [vmem:[#allocation5 + $0x538] sm:$0xff]  ;;  %v2186_v11 = vpack.c.bf16 %v536_v57, %v530_v55  ;;  %v768_v6 = vld [vmem:[#allocation5 + $0xc10] sm:$0xff] }
 0x211   : > { %v2074_v55 = vpack.c.bf16 %v774_v50, %v768_v6  ;;  %v597_v57 = vld [vmem:[#allocation5 + $0x6b8] sm:$0xff]  ;;  %v639_v6 = vld [vmem:[#allocation5 + $0x808] sm:$0xff] }
 0x212   : > { %2043 = vmatpush1.bf16.msra.mxu1 %v2042_v15  ;;  %v542_v15 = vld [vmem:[#allocation5 + $0x500] sm:$0xff]  ;;  %v645_v50 = vld [vmem:[#allocation5 + $0x838] sm:$0xff] }
 0x213   : > { %2171 = vmatpush1.bf16.msra.mxu0 %v2170_v16  ;;  %2045 = vmatprep.subr.bf16.mxu1 %v2044_v17  ;;  %v2188_v16 = vpack.c.bf16 %v549_v9, %v543_v7  ;;  %v548_v17 = vld [vmem:[#allocation5 + $0x530] sm:$0xff]  ;;  %v786_v7 = vld [vmem:[#allocation5 + $0xca0] sm:$0xff] }
 0x214   : > { %2173 = vmatprep.subr.bf16.mxu0 %v2172_v21  ;;  %v561_v21 = vld [vmem:[#allocation5 + $0x598] sm:$0xff]  ;;  %v2190_v23 = vpack.c.bf16 %v548_v17, %v542_v15  ;;  %v590_v9 = vld [vmem:[#allocation5 + $0x680] sm:$0xff]  ;;  %v603_v15 = vld [vmem:[#allocation5 + $0x6e8] sm:$0xff]  ;;  %v2078_v17 = vpack.c.bf16 %v786_v7, %v780_v3 }
 0x215   : > { %v847_v3 = vld [vmem:[#allocation5 + $0xe88] sm:$0xff] }
 0x216   : > { %2047 = vmatpush1.bf16.msra.mxu1 %v2046_v27  ;;  %v554_v27 = vld [vmem:[#allocation5 + $0x560] sm:$0xff]  ;;  %v651_v7 = vld [vmem:[#allocation5 + $0x868] sm:$0xff] }
 0x217   : > { %2175 = vmatpush1.bf16.msra.mxu0 %v2174_v28  ;;  %2049 = vmatprep.subr.bf16.mxu1 %v2048_v29  ;;  %v2192_v28 = vpack.c.bf16 %v561_v21, %v555_v20  ;;  %v560_v29 = vld [vmem:[#allocation5 + $0x590] sm:$0xff]  ;;  %v798_v21 = vld [vmem:[#allocation5 + $0xd00] sm:$0xff] }
 0x218   : > { %2177 = vmatprep.subr.bf16.mxu0 %v2176_v40  ;;  %v573_v40 = vld [vmem:[#allocation5 + $0x5f8] sm:$0xff]  ;;  %v2194_v42 = vpack.c.bf16 %v560_v29, %v554_v27  ;;  %v792_v20 = vld [vmem:[#allocation5 + $0xcd0] sm:$0xff]  ;;  %v615_v27 = vld [vmem:[#allocation5 + $0x748] sm:$0xff] }
 0x21a   : > { %2051 = vmatpush1.bf16.msra.mxu1 %v2050_v41  ;;  %v566_v41 = vld [vmem:[#allocation5 + $0x5c0] sm:$0xff] }
 0x21b   : > { %2179 = vmatpush1.bf16.msra.mxu0 %v2178_v36  ;;  %2053 = vmatprep.subr.bf16.mxu1 %v2052_v37  ;;  %v2196_v36 = vpack.c.bf16 %v573_v40, %v567_v32  ;;  %v572_v37 = vld [vmem:[#allocation5 + $0x5f0] sm:$0xff]  ;;  %v810_v32 = vld [vmem:[#allocation5 + $0xd60] sm:$0xff] }
 0x21c   : > { %2181 = vmatprep.subr.bf16.mxu0 %v2180_v2  ;;  %v585_v2 = vld [vmem:[#allocation5 + $0x658] sm:$0xff]  ;;  %v2198_v47 = vpack.c.bf16 %v572_v37, %v566_v41  ;;  %v614_v40 = vld [vmem:[#allocation5 + $0x740] sm:$0xff]  ;;  %v2086_v41 = vpack.c.bf16 %v810_v32, %v804_v31  ;;  %v675_v31 = vld [vmem:[#allocation5 + $0x928] sm:$0xff] }
 0x21d   : > { %v681_v32 = vld [vmem:[#allocation5 + $0x958] sm:$0xff] }
 0x21e   : > { %2055 = vmatpush1.bf16.msra.mxu1 %v2054_v51  ;;  %v2200_v51 = vpack.c.bf16 %v585_v2, %v579_v1  ;;  %v626_v1 = vld [vmem:[#allocation5 + $0x7a0] sm:$0xff]  ;;  %v2216_v2 = vpack.c.bf16 %v633_v35, %v627_v39  ;;  %v2232_v35 = vpack.c.bf16 %v681_v32, %v675_v31 }
 0x21f   : > { %2183 = vmatpush1.bf16.msra.mxu0 %v2182_v43  ;;  %2057 = vmatprep.subr.bf16.mxu1 %v2056_v52  ;;  %v578_v43 = vld [vmem:[#allocation5 + $0x620] sm:$0xff]  ;;  %v584_v52 = vld [vmem:[#allocation5 + $0x650] sm:$0xff] }
 0x220   : > { %2185 = vmatprep.subr.bf16.mxu0 %v2184_v56  ;;  %v591_v56 = vld [vmem:[#allocation5 + $0x688] sm:$0xff]  ;;  %v2202_v60 = vpack.c.bf16 %v584_v52, %v578_v43  ;;  %v674_v39 = vld [vmem:[#allocation5 + $0x920] sm:$0xff] }
 0x221   : > { %v2204_v14 = vpack.c.bf16 %v597_v57, %v591_v56  ;;  %v2220_v56 = vpack.c.bf16 %v645_v50, %v639_v6  ;;  %v644_v57 = vld [vmem:[#allocation5 + $0x830] sm:$0xff]  ;;  %v686_v6 = vld [vmem:[#allocation5 + $0x980] sm:$0xff] }
 0x222   : > { %2059 = vmatpush1.bf16.msra.mxu1 %v2058_v10  ;;  %v2076_v10 = vpack.c.bf16 %v787_v8, %v781_v54  ;;  %v828_v54 = vld [vmem:[#allocation5 + $0xdf0] sm:$0xff]  ;;  %v834_v8 = vld [vmem:[#allocation5 + $0xe20] sm:$0xff] }
 0x223   : > { %2187 = vmatpush1.bf16.msra.mxu0 %v2186_v11  ;;  %2061 = vmatprep.subr.bf16.mxu1 %v2060_v12  ;;  %v596_v11 = vld [vmem:[#allocation5 + $0x6b0] sm:$0xff]  ;;  %v793_v12 = vld [vmem:[#allocation5 + $0xcd8] sm:$0xff]  ;;  %v722_v31 = vld [vmem:[#allocation5 + $0xaa0] sm:$0xff] }
 0x224   : > { %2189 = vmatprep.subr.bf16.mxu0 %v2188_v16  ;;  %v609_v16 = vld [vmem:[#allocation5 + $0x718] sm:$0xff]  ;;  %v2206_v18 = vpack.c.bf16 %v596_v11, %v590_v9  ;;  %v2080_v19 = vpack.c.bf16 %v799_v13, %v793_v12  ;;  %v840_v13 = vld [vmem:[#allocation5 + $0xe50] sm:$0xff] }
 0x225   : > { %v657_v9 = vld [vmem:[#allocation5 + $0x898] sm:$0xff] }
 0x226   : > { %2063 = vmatpush1.bf16.msra.mxu1 %v2062_v22  ;;  %v602_v22 = vld [vmem:[#allocation5 + $0x6e0] sm:$0xff] }
 0x227   : > { %2191 = vmatpush1.bf16.msra.mxu0 %v2190_v23  ;;  %2065 = vmatprep.subr.bf16.mxu1 %v2064_v24  ;;  %v2208_v23 = vpack.c.bf16 %v609_v16, %v603_v15  ;;  %v608_v24 = vld [vmem:[#allocation5 + $0x710] sm:$0xff]  ;;  %v650_v15 = vld [vmem:[#allocation5 + $0x860] sm:$0xff]  ;;  %v2224_v16 = vpack.c.bf16 %v657_v9, %v651_v7 }
 0x228   : > { %2193 = vmatprep.subr.bf16.mxu0 %v2192_v28  ;;  %v2082_v28 = vpack.c.bf16 %v798_v21, %v792_v20  ;;  %v2210_v29 = vpack.c.bf16 %v608_v24, %v602_v22  ;;  %v663_v20 = vld [vmem:[#allocation5 + $0x8c8] sm:$0xff]  ;;  %v669_v21 = vld [vmem:[#allocation5 + $0x8f8] sm:$0xff]  ;;  %v698_v7 = vld [vmem:[#allocation5 + $0x9e0] sm:$0xff] }
 0x22a   : > { %2067 = vmatpush1.bf16.msra.mxu1 %v2066_v33 }
 0x22b   : > { %2195 = vmatpush1.bf16.msra.mxu0 %v2194_v42  ;;  %2069 = vmatprep.subr.bf16.mxu1 %v2068_v34  ;;  %v817_v42 = vld [vmem:[#allocation5 + $0xd98] sm:$0xff]  ;;  %v823_v34 = vld [vmem:[#allocation5 + $0xdc8] sm:$0xff] }
 0x22c   : > { %2197 = vmatprep.subr.bf16.mxu0 %v2196_v36  ;;  %v2088_v37 = vpack.c.bf16 %v823_v34, %v817_v42  ;;  %v864_v42 = vld [vmem:[#allocation5 + $0xf10] sm:$0xff]  ;;  %v870_v34 = vld [vmem:[#allocation5 + $0xf40] sm:$0xff] }
 0x22e   : > { %2071 = vmatpush1.bf16.msra.mxu1 %v2070_v4  ;;  %v632_v4 = vld [vmem:[#allocation5 + $0x7d0] sm:$0xff] }
 0x22f   : > { %2199 = vmatpush1.bf16.msra.mxu0 %v2198_v47  ;;  %2073 = vmatprep.subr.bf16.mxu1 %v2072_v49  ;;  %v829_v47 = vld [vmem:[#allocation5 + $0xdf8] sm:$0xff]  ;;  %v835_v49 = vld [vmem:[#allocation5 + $0xe28] sm:$0xff]  ;;  %v2218_v43 = vpack.c.bf16 %v632_v4, %v626_v1  ;;  %v2106_v1 = vpack.c.bf16 %v870_v34, %v864_v42 }
 0x230   : > { %2201 = vmatprep.subr.bf16.mxu0 %v2200_v51  ;;  %v2090_v51 = vpack.c.bf16 %v822_v0, %v816_v38  ;;  %v2092_v52 = vpack.c.bf16 %v835_v49, %v829_v47  ;;  %v687_v38 = vld [vmem:[#allocation5 + $0x988] sm:$0xff]  ;;  %v693_v0 = vld [vmem:[#allocation5 + $0x9b8] sm:$0xff]  ;;  %v876_v47 = vld [vmem:[#allocation5 + $0xf70] sm:$0xff] }
 0x231   : > { %1307 = vmatmul.mubr.f32.vlgmr.msra.gmra.mrb[2].mxu1 %v2826_v45  ;;  %v882_v49 = vld [vmem:[#allocation5 + $0xfa0] sm:$0xff]  ;;  %v2236_v50 = vpack.c.bf16 %v693_v0, %v687_v38  ;;  %v735_v42 = vld [vmem:[#allocation5 + $0xb08] sm:$0xff]  ;;  %v741_v34 = vld [vmem:[#allocation5 + $0xb38] sm:$0xff] }
 0x232   : > { %1449 = vmatmul.mubr.f32.vlgmr.msra.gmra.mrb[2].mxu0 %v2824_v44  ;;  %2075 = vmatpush1.bf16.msra.mxu1 %v2074_v55  ;;  %v621_v44 = vld [vmem:[#allocation5 + $0x778] sm:$0xff]  ;;  %v638_v55 = vld [vmem:[#allocation5 + $0x800] sm:$0xff]  ;;  %v2252_v0 = vpack.c.bf16 %v741_v34, %v735_v42 }
 0x233   : > { %1377 = vmatprep.mubr.f32.mxu1 %v2834_v53  ;;  %2203 = vmatpush1.bf16.msra.mxu0 %v2202_v60  ;;  %v2212_v33 = vpack.c.bf16 %v621_v44, %v615_v27  ;;  %v841_v60 = vld [vmem:[#allocation5 + $0xe58] sm:$0xff]  ;;  %v2222_v11 = vpack.c.bf16 %v644_v57, %v638_v55  ;;  %v662_v27 = vld [vmem:[#allocation5 + $0x8c0] sm:$0xff]  ;;  %v2228_v44 = vpack.c.bf16 %v669_v21, %v663_v20 }
 0x234   : > { %1519 = vmatprep.mubr.f32.mxu0 %v2822_v46  ;;  %2077 = vmatprep.subr.bf16.mxu1 %v2076_v10  ;;  %v620_v46 = vld [vmem:[#allocation5 + $0x770] sm:$0xff]  ;;  %v2094_v10 = vpack.c.bf16 %v834_v8, %v828_v54  ;;  %v2096_v12 = vpack.c.bf16 %v847_v3, %v841_v60  ;;  %v699_v54 = vld [vmem:[#allocation5 + $0x9e8] sm:$0xff]  ;;  %v705_v8 = vld [vmem:[#allocation5 + $0xa18] sm:$0xff]  ;;  %v2110_v55 = vpack.c.bf16 %v882_v49, %v876_v47 }
 0x235   : > { %2205 = vmatprep.subr.bf16.mxu0 %v2204_v14  ;;  %v2214_v36 = vpack.c.bf16 %v620_v46, %v614_v40  ;;  %v846_v14 = vld [vmem:[#allocation5 + $0xe80] sm:$0xff]  ;;  %v2102_v40 = vpack.c.bf16 %v858_v26, %v852_v25  ;;  %v888_v60 = vld [vmem:[#allocation5 + $0xfd0] sm:$0xff]  ;;  %v2240_v9 = vpack.c.bf16 %v705_v8, %v699_v54  ;;  %v723_v25 = vld [vmem:[#allocation5 + $0xaa8] sm:$0xff] }
 0x236   : > { %2079 = vmatpush1.bf16.msra.mxu1 %v2078_v17  ;;  %v656_v17 = vld [vmem:[#allocation5 + $0x890] sm:$0xff]  ;;  %v2098_v22 = vpack.c.bf16 %v846_v14, %v840_v13  ;;  %v894_v3 = vld [vmem:[#allocation5 + $0x1000] sm:$0xff]  ;;  %v711_v13 = vld [vmem:[#allocation5 + $0xa48] sm:$0xff] }
 0x237   : > { %2207 = vmatpush1.bf16.msra.mxu0 %v2206_v18  ;;  %2081 = vmatprep.subr.bf16.mxu1 %v2080_v19  ;;  %v853_v18 = vld [vmem:[#allocation5 + $0xeb8] sm:$0xff]  ;;  %v859_v19 = vld [vmem:[#allocation5 + $0xee8] sm:$0xff]  ;;  %v710_v20 = vld [vmem:[#allocation5 + $0xa40] sm:$0xff] }
 0x238   : > { %2209 = vmatprep.subr.bf16.mxu0 %v2208_v23  ;;  %v2226_v23 = vpack.c.bf16 %v656_v17, %v650_v15  ;;  %v2100_v24 = vpack.c.bf16 %v859_v19, %v853_v18  ;;  %v717_v14 = vld [vmem:[#allocation5 + $0xa78] sm:$0xff]  ;;  %v2114_v15 = vpack.c.bf16 %v894_v3, %v888_v60  ;;  %v900_v18 = vld [vmem:[#allocation5 + $0x1030] sm:$0xff]  ;;  %v906_v19 = vld [vmem:[#allocation5 + $0x1060] sm:$0xff] }
 0x239   : > { %v2244_v21 = vpack.c.bf16 %v717_v14, %v711_v13  ;;  %v729_v26 = vld [vmem:[#allocation5 + $0xad8] sm:$0xff]  ;;  %v734_v38 = vld [vmem:[#allocation5 + $0xb00] sm:$0xff]  ;;  %v747_v47 = vld [vmem:[#allocation5 + $0xb68] sm:$0xff] }
 0x23a   : > { %2083 = vmatpush1.bf16.msra.mxu1 %v2082_v28  ;;  %v668_v28 = vld [vmem:[#allocation5 + $0x8f0] sm:$0xff]  ;;  %v2248_v32 = vpack.c.bf16 %v729_v26, %v723_v25  ;;  %v753_v49 = vld [vmem:[#allocation5 + $0xb98] sm:$0xff]  ;;  %v746_v54 = vld [vmem:[#allocation5 + $0xb60] sm:$0xff] }
 0x23b   : > { %2211 = vmatpush1.bf16.msra.mxu0 %v2210_v29  ;;  %2085 = vmatprep.subr.bf16.mxu1 %v2084_v30  ;;  %v865_v29 = vld [vmem:[#allocation5 + $0xf18] sm:$0xff]  ;;  %v871_v30 = vld [vmem:[#allocation5 + $0xf48] sm:$0xff]  ;;  %v2256_v8 = vpack.c.bf16 %v753_v49, %v747_v47  ;;  %v758_v14 = vld [vmem:[#allocation5 + $0xbc0] sm:$0xff] }
 0x23c   : > { %2213 = vmatprep.subr.bf16.mxu0 %v2212_v33  ;;  %v2230_v33 = vpack.c.bf16 %v668_v28, %v662_v27  ;;  %v2104_v46 = vpack.c.bf16 %v871_v30, %v865_v29  ;;  %v2118_v27 = vpack.c.bf16 %v906_v19, %v900_v18  ;;  %v912_v29 = vld [vmem:[#allocation5 + $0x1090] sm:$0xff]  ;;  %v918_v30 = vld [vmem:[#allocation5 + $0x10c0] sm:$0xff]  ;;  %v759_v60 = vld [vmem:[#allocation5 + $0xbc8] sm:$0xff] }
 0x23d   : > { %v765_v3 = vld [vmem:[#allocation5 + $0xbf8] sm:$0xff]  ;;  %v830_v47 = vld [vmem:[#allocation5 + $0xe00] sm:$0xff]  ;;  %v836_v49 = vld [vmem:[#allocation5 + $0xe30] sm:$0xff] }
 0x23e   : > { %2087 = vmatpush1.bf16.msra.mxu1 %v2086_v41  ;;  %v680_v41 = vld [vmem:[#allocation5 + $0x950] sm:$0xff]  ;;  %v2260_v13 = vpack.c.bf16 %v765_v3, %v759_v60 }
 0x23f   : > { %2215 = vmatpush1.bf16.msra.mxu0 %v2214_v36  ;;  %2089 = vmatprep.subr.bf16.mxu1 %v2088_v37  ;;  %v877_v36 = vld [vmem:[#allocation5 + $0xf78] sm:$0xff]  ;;  %v883_v37 = vld [vmem:[#allocation5 + $0xfa8] sm:$0xff] }
 0x240   : > { %2217 = vmatprep.subr.bf16.mxu0 %v2216_v2  ;;  %v2234_v2 = vpack.c.bf16 %v680_v41, %v674_v39  ;;  %v2108_v4 = vpack.c.bf16 %v883_v37, %v877_v36  ;;  %v2122_v39 = vpack.c.bf16 %v918_v30, %v912_v29  ;;  %v924_v36 = vld [vmem:[#allocation5 + $0x10f0] sm:$0xff]  ;;  %v930_v37 = vld [vmem:[#allocation5 + $0x1120] sm:$0xff]  ;;  %v801_v29 = vld [vmem:[#allocation5 + $0xd18] sm:$0xff] }
 0x242   : > { %2091 = vmatpush1.bf16.msra.mxu1 %v2090_v51  ;;  %v692_v51 = vld [vmem:[#allocation5 + $0x9b0] sm:$0xff] }
 0x243   : > { %2219 = vmatpush1.bf16.msra.mxu0 %v2218_v43  ;;  %2093 = vmatprep.subr.bf16.mxu1 %v2092_v52  ;;  %v889_v43 = vld [vmem:[#allocation5 + $0xfd8] sm:$0xff]  ;;  %v895_v52 = vld [vmem:[#allocation5 + $0x1008] sm:$0xff] }
 0x244   : > { %2221 = vmatprep.subr.bf16.mxu0 %v2220_v56  ;;  %v2238_v56 = vpack.c.bf16 %v692_v51, %v686_v6  ;;  %v2112_v57 = vpack.c.bf16 %v895_v52, %v889_v43  ;;  %v2126_v6 = vpack.c.bf16 %v930_v37, %v924_v36  ;;  %v936_v43 = vld [vmem:[#allocation5 + $0x1150] sm:$0xff]  ;;  %v942_v52 = vld [vmem:[#allocation5 + $0x1180] sm:$0xff]  ;;  %v825_v36 = vld [vmem:[#allocation5 + $0xdd8] sm:$0xff] }
 0x246   : > { %2095 = vmatpush1.bf16.msra.mxu1 %v2094_v10  ;;  %v704_v10 = vld [vmem:[#allocation5 + $0xa10] sm:$0xff] }
 0x247   : > { %2223 = vmatpush1.bf16.msra.mxu0 %v2222_v11  ;;  %2097 = vmatprep.subr.bf16.mxu1 %v2096_v12  ;;  %v901_v11 = vld [vmem:[#allocation5 + $0x1038] sm:$0xff]  ;;  %v907_v12 = vld [vmem:[#allocation5 + $0x1068] sm:$0xff] }
 0x248   : > { %2225 = vmatprep.subr.bf16.mxu0 %v2224_v16  ;;  %v2242_v16 = vpack.c.bf16 %v704_v10, %v698_v7  ;;  %v2116_v17 = vpack.c.bf16 %v907_v12, %v901_v11  ;;  %v2130_v7 = vpack.c.bf16 %v942_v52, %v936_v43  ;;  %v948_v11 = vld [vmem:[#allocation5 + $0x11b0] sm:$0xff]  ;;  %v954_v12 = vld [vmem:[#allocation5 + $0x11e0] sm:$0xff] }
 0x249   : > { %v2134_v18 = vpack.c.bf16 %v954_v12, %v948_v11  ;;  %v873_v11 = vld [vmem:[#allocation5 + $0xf58] sm:$0xff] }
 0x24a   : > { %2099 = vmatpush1.bf16.msra.mxu1 %v2098_v22  ;;  %v716_v22 = vld [vmem:[#allocation5 + $0xa70] sm:$0xff] }
 0x24b   : > { %2227 = vmatpush1.bf16.msra.mxu0 %v2226_v23  ;;  %2101 = vmatprep.subr.bf16.mxu1 %v2100_v24  ;;  %v913_v23 = vld [vmem:[#allocation5 + $0x1098] sm:$0xff]  ;;  %v919_v24 = vld [vmem:[#allocation5 + $0x10c8] sm:$0xff] }
 0x24c   : > { %2229 = vmatprep.subr.bf16.mxu0 %v2228_v44  ;;  %v2246_v44 = vpack.c.bf16 %v716_v22, %v710_v20  ;;  %v2120_v28 = vpack.c.bf16 %v919_v24, %v913_v23  ;;  %v776_v22 = vld [vmem:[#allocation5 + $0xc50] sm:$0xff]  ;;  %v783_v23 = vld [vmem:[#allocation5 + $0xc88] sm:$0xff]  ;;  %v789_v24 = vld [vmem:[#allocation5 + $0xcb8] sm:$0xff] }
 0x24d   : > { %v2268_v26 = vpack.c.bf16 %v789_v24, %v783_v23  ;;  %v897_v23 = vld [vmem:[#allocation5 + $0x1018] sm:$0xff] }
 0x24e   : > { %2103 = vmatpush1.bf16.msra.mxu1 %v2102_v40  ;;  %v728_v40 = vld [vmem:[#allocation5 + $0xad0] sm:$0xff] }
 0x24f   : > { %2231 = vmatpush1.bf16.msra.mxu0 %v2230_v33  ;;  %2105 = vmatprep.subr.bf16.mxu1 %v2104_v46  ;;  %v925_v33 = vld [vmem:[#allocation5 + $0x10f8] sm:$0xff]  ;;  %v931_v46 = vld [vmem:[#allocation5 + $0x1128] sm:$0xff] }
 0x250   : > { %2233 = vmatprep.subr.bf16.mxu0 %v2232_v35  ;;  %v2250_v35 = vpack.c.bf16 %v728_v40, %v722_v31  ;;  %v2124_v41 = vpack.c.bf16 %v931_v46, %v925_v33  ;;  %v800_v40 = vld [vmem:[#allocation5 + $0xd10] sm:$0xff]  ;;  %v807_v33 = vld [vmem:[#allocation5 + $0xd48] sm:$0xff]  ;;  %v813_v46 = vld [vmem:[#allocation5 + $0xd78] sm:$0xff] }
 0x251   : > { %v2276_v34 = vpack.c.bf16 %v813_v46, %v807_v33  ;;  %v921_v33 = vld [vmem:[#allocation5 + $0x10d8] sm:$0xff] }
 0x252   : > { %2107 = vmatpush1.bf16.msra.mxu1 %v2106_v1  ;;  %v740_v1 = vld [vmem:[#allocation5 + $0xb30] sm:$0xff] }
 0x253   : > { %2235 = vmatpush1.bf16.msra.mxu0 %v2234_v2  ;;  %2109 = vmatprep.subr.bf16.mxu1 %v2108_v4  ;;  %v937_v2 = vld [vmem:[#allocation5 + $0x1158] sm:$0xff]  ;;  %v943_v4 = vld [vmem:[#allocation5 + $0x1188] sm:$0xff] }
 0x254   : > { %2237 = vmatprep.subr.bf16.mxu0 %v2236_v50  ;;  %v2254_v50 = vpack.c.bf16 %v740_v1, %v734_v38  ;;  %v2128_v51 = vpack.c.bf16 %v943_v4, %v937_v2  ;;  %v824_v38 = vld [vmem:[#allocation5 + $0xdd0] sm:$0xff]  ;;  %v837_v1 = vld [vmem:[#allocation5 + $0xe38] sm:$0xff] }
 0x256   : > { %2111 = vmatpush1.bf16.msra.mxu1 %v2110_v55  ;;  %v752_v55 = vld [vmem:[#allocation5 + $0xb90] sm:$0xff] }
 0x257   : > { %2239 = vmatpush1.bf16.msra.mxu0 %v2238_v56  ;;  %2113 = vmatprep.subr.bf16.mxu1 %v2112_v57  ;;  %v949_v56 = vld [vmem:[#allocation5 + $0x11b8] sm:$0xff]  ;;  %v955_v57 = vld [vmem:[#allocation5 + $0x11e8] sm:$0xff] }
 0x258   : > { %2241 = vmatprep.subr.bf16.mxu0 %v2240_v9  ;;  %v2258_v9 = vpack.c.bf16 %v752_v55, %v746_v54  ;;  %v2132_v10 = vpack.c.bf16 %v955_v57, %v949_v56  ;;  %v842_v54 = vld [vmem:[#allocation5 + $0xe60] sm:$0xff]  ;;  %v855_v56 = vld [vmem:[#allocation5 + $0xec8] sm:$0xff]  ;;  %v861_v57 = vld [vmem:[#allocation5 + $0xef8] sm:$0xff] }
 0x259   : > { %v2292_v3 = vpack.c.bf16 %v861_v57, %v855_v56  ;;  %v1603_v56 = vld [vmem:[%s2925_s4] sm:$0x3f] }
 0x25a   : > { %2115 = vmatpush1.bf16.msra.mxu1 %v2114_v15  ;;  %v764_v15 = vld [vmem:[#allocation5 + $0xbf0] sm:$0xff] }
 0x25b   : > { %2243 = vmatpush1.bf16.msra.mxu0 %v2242_v16  ;;  %2117 = vmatprep.subr.bf16.mxu1 %v2116_v17  ;;  %v771_v16 = vld [vmem:[#allocation5 + $0xc28] sm:$0xff]  ;;  %v777_v17 = vld [vmem:[#allocation5 + $0xc58] sm:$0xff]  ;;  %v2262_v19 = vpack.c.bf16 %v764_v15, %v758_v14  ;;  %v866_v14 = vld [vmem:[#allocation5 + $0xf20] sm:$0xff] }
 0x25c   : > { %2245 = vmatprep.subr.bf16.mxu0 %v2244_v21  ;;  %v2264_v20 = vpack.c.bf16 %v777_v17, %v771_v16  ;;  %v770_v21 = vld [vmem:[#allocation5 + $0xc20] sm:$0xff]  ;;  %v872_v15 = vld [vmem:[#allocation5 + $0xf50] sm:$0xff]  ;;  %v879_v16 = vld [vmem:[#allocation5 + $0xf88] sm:$0xff] }
 0x25d   : > { %v2266_v25 = vpack.c.bf16 %v776_v22, %v770_v21  ;;  %v885_v17 = vld [vmem:[#allocation5 + $0xfb8] sm:$0xff]  ;;  %v884_v21 = vld [vmem:[#allocation5 + $0xfb0] sm:$0xff]  ;;  %v891_v22 = vld [vmem:[#allocation5 + $0xfe8] sm:$0xff] }
 0x25e   : > { %2119 = vmatpush1.bf16.msra.mxu1 %v2118_v27  ;;  %v782_v27 = vld [vmem:[#allocation5 + $0xc80] sm:$0xff] }
 0x25f   : > { %2247 = vmatpush1.bf16.msra.mxu0 %v2246_v44  ;;  %2121 = vmatprep.subr.bf16.mxu1 %v2120_v28  ;;  %v788_v44 = vld [vmem:[#allocation5 + $0xcb0] sm:$0xff]  ;;  %v795_v28 = vld [vmem:[#allocation5 + $0xce8] sm:$0xff] }
 0x260   : > { %2249 = vmatprep.subr.bf16.mxu0 %v2248_v32  ;;  %v2270_v30 = vpack.c.bf16 %v788_v44, %v782_v27  ;;  %v2272_v31 = vpack.c.bf16 %v801_v29, %v795_v28  ;;  %v794_v32 = vld [vmem:[#allocation5 + $0xce0] sm:$0xff]  ;;  %v896_v27 = vld [vmem:[#allocation5 + $0x1010] sm:$0xff]  ;;  %v903_v44 = vld [vmem:[#allocation5 + $0x1048] sm:$0xff] }
 0x261   : > { %v2274_v42 = vpack.c.bf16 %v800_v40, %v794_v32  ;;  %v909_v28 = vld [vmem:[#allocation5 + $0x1078] sm:$0xff]  ;;  %v908_v32 = vld [vmem:[#allocation5 + $0x1070] sm:$0xff]  ;;  %v915_v40 = vld [vmem:[#allocation5 + $0x10a8] sm:$0xff] }
 0x262   : > { %2123 = vmatpush1.bf16.msra.mxu1 %v2122_v39  ;;  %v806_v39 = vld [vmem:[#allocation5 + $0xd40] sm:$0xff] }
 0x263   : > { %2251 = vmatpush1.bf16.msra.mxu0 %v2250_v35  ;;  %2125 = vmatprep.subr.bf16.mxu1 %v2124_v41  ;;  %v812_v35 = vld [vmem:[#allocation5 + $0xd70] sm:$0xff]  ;;  %v819_v41 = vld [vmem:[#allocation5 + $0xda8] sm:$0xff] }
 0x264   : > { %2253 = vmatprep.subr.bf16.mxu0 %v2252_v0  ;;  %v2280_v37 = vpack.c.bf16 %v825_v36, %v819_v41  ;;  %v831_v0 = vld [vmem:[#allocation5 + $0xe08] sm:$0xff]  ;;  %v933_v41 = vld [vmem:[#allocation5 + $0x1138] sm:$0xff] }
 0x265   : > { %v2284_v4 = vpack.c.bf16 %v837_v1, %v831_v0  ;;  %v945_v0 = vld [vmem:[#allocation5 + $0x1198] sm:$0xff] }
 0x266   : > { %2127 = vmatpush1.bf16.msra.mxu1 %v2126_v6  ;;  %v843_v6 = vld [vmem:[#allocation5 + $0xe68] sm:$0xff] }
 0x267   : > { %2255 = vmatpush1.bf16.msra.mxu0 %v2254_v50  ;;  %2129 = vmatprep.subr.bf16.mxu1 %v2128_v51  ;;  %v849_v50 = vld [vmem:[#allocation5 + $0xe98] sm:$0xff]  ;;  %v2286_v51 = vpack.c.bf16 %v836_v49, %v830_v47  ;;  %v944_v47 = vld [vmem:[#allocation5 + $0x1190] sm:$0xff]  ;;  %v951_v49 = vld [vmem:[#allocation5 + $0x11c8] sm:$0xff] }
 0x268   : > { %2257 = vmatprep.subr.bf16.mxu0 %v2256_v8  ;;  %v2288_v52 = vpack.c.bf16 %v849_v50, %v843_v6  ;;  %v848_v8 = vld [vmem:[#allocation5 + $0xe90] sm:$0xff]  ;;  %v957_v6 = vld [vmem:[#allocation5 + $0x11f8] sm:$0xff] }
 0x269   : > { %v2290_v60 = vpack.c.bf16 %v848_v8, %v842_v54  ;;  %v956_v54 = vld [vmem:[#allocation5 + $0x11f0] sm:$0xff] }
 0x26a   : > { %2131 = vmatpush1.bf16.msra.mxu1 %v2130_v7  ;;  %v854_v7 = vld [vmem:[#allocation5 + $0xec0] sm:$0xff] }
 0x26b   : > { %2259 = vmatpush1.bf16.msra.mxu0 %v2258_v9  ;;  %2133 = vmatprep.subr.bf16.mxu1 %v2132_v10  ;;  %v860_v9 = vld [vmem:[#allocation5 + $0xef0] sm:$0xff]  ;;  %v867_v10 = vld [vmem:[#allocation5 + $0xf28] sm:$0xff] }
 0x26c   : > { %2261 = vmatprep.subr.bf16.mxu0 %v2260_v13  ;;  %v2294_v12 = vpack.c.bf16 %v860_v9, %v854_v7  ;;  %v2296_v13 = vpack.c.bf16 %v873_v11, %v867_v10  ;;  %v1612_v10 = vrot.slane %v1603_v56, %v2784_v58  ;;  %v2407_v11 = vld [vmem:[%s2720_s27] sm:$0xff] }
 0x26e   : > { %2135 = vmatpush1.bf16.msra.mxu1 %v2134_v18  ;;  %v2298_v18 = vpack.c.bf16 %v872_v15, %v866_v14 }
 0x26f   : > { %2263 = vmatpush1.bf16.msra.mxu0 %v2262_v19  ;;  %v2300_v19 = vpack.c.bf16 %v885_v17, %v879_v16  ;;  %v2409_v16 = vld [vmem:[%s2720_s27 + $0x10] sm:$0xff] }
 0x270   : > { %2265 = vmatprep.subr.bf16.mxu0 %v2264_v20  ;;  %v878_v20 = vld [vmem:[#allocation5 + $0xf80] sm:$0xff] }
 0x271   : > { %1378 = vmatmul.mubr.f32.vlgmr.msra.gmra.mrb[2].mxu1 %v2828_v48  ;;  %v2302_v24 = vpack.c.bf16 %v884_v21, %v878_v20 }
 0x272   : > { %1520 = vmatmul.mubr.f32.vlgmr.msra.gmra.mrb[2].mxu0 %v2826_v45  ;;  %v2278_v45 = vpack.c.bf16 %v812_v35, %v806_v39  ;;  %v920_v39 = vld [vmem:[#allocation5 + $0x10d0] sm:$0xff]  ;;  %v927_v35 = vld [vmem:[#allocation5 + $0x1108] sm:$0xff] }
 0x273   : > { %2267 = vmatpush1.bf16.msra.mxu0 %v2266_v25  ;;  %1590 = vmatprep.mubr.f32.mxu0 %v2834_v53  ;;  %v818_v53 = vld [vmem:[#allocation5 + $0xda0] sm:$0xff]  ;;  %v2304_v25 = vpack.c.bf16 %v897_v23, %v891_v22  ;;  %v1624_v22 = vrot.slane %v1603_v56, %v2800_v5 }
 0x274   : > { %2269 = vmatprep.subr.bf16.mxu0 %v2268_v26  ;;  %v2282_v2 = vpack.c.bf16 %v824_v38, %v818_v53  ;;  %v890_v26 = vld [vmem:[#allocation5 + $0xfe0] sm:$0xff]  ;;  %v932_v53 = vld [vmem:[#allocation5 + $0x1130] sm:$0xff]  ;;  %v939_v38 = vld [vmem:[#allocation5 + $0x1168] sm:$0xff] }
 0x275   : > { %v2306_v29 = vpack.c.bf16 %v896_v27, %v890_v26  ;;  %v2412_v26 = vld [vmem:[%s2720_s27 + $0x28] sm:$0xff] }
 0x277   : > { %2271 = vmatpush1.bf16.msra.mxu0 %v2270_v30  ;;  %v2308_v30 = vpack.c.bf16 %v909_v28, %v903_v44 }
 0x278   : > { %2273 = vmatprep.subr.bf16.mxu0 %v2272_v31  ;;  %v902_v31 = vld [vmem:[#allocation5 + $0x1040] sm:$0xff] }
 0x279   : > { %v2310_v46 = vpack.c.bf16 %v908_v32, %v902_v31 }
 0x27b   : > { %2275 = vmatpush1.bf16.msra.mxu0 %v2274_v42  ;;  %v2312_v42 = vpack.c.bf16 %v921_v33, %v915_v40 }
 0x27c   : > { %2277 = vmatprep.subr.bf16.mxu0 %v2276_v34  ;;  %v914_v34 = vld [vmem:[#allocation5 + $0x10a0] sm:$0xff] }
 0x27d   : > { %v2314_v36 = vpack.c.bf16 %v920_v39, %v914_v34 }
 0x27f   : > { %2279 = vmatpush1.bf16.msra.mxu0 %v2278_v45  ;;  %v2316_v45 = vpack.c.bf16 %v933_v41, %v927_v35 }
 0x280   : > { %2281 = vmatprep.subr.bf16.mxu0 %v2280_v37  ;;  %v926_v37 = vld [vmem:[#allocation5 + $0x1100] sm:$0xff] }
 0x281   : > { %v2318_v1 = vpack.c.bf16 %v932_v53, %v926_v37 }
 0x283   : > { %2283 = vmatpush1.bf16.msra.mxu0 %v2282_v2  ;;  %v2320_v2 = vpack.c.bf16 %v945_v0, %v939_v38 }
 0x284   : > { %v2849_v43 = vpop.f32.mrb[0].mxu1  ;;  %2285 = vmatprep.subr.bf16.mxu0 %v2284_v4  ;;  %v938_v4 = vld [vmem:[#allocation5 + $0x1160] sm:$0xff] }
 0x285   : > { %v2851_v55 = vpop.f32.mrb[1].mxu1  ;;  %v2322_v50 = vpack.c.bf16 %v944_v47, %v938_v4 }
 0x287   : > { %2287 = vmatpush1.bf16.msra.mxu0 %v2286_v51  ;;  %v2324_v51 = vpack.c.bf16 %v957_v6, %v951_v49 }
 0x288   : > { %2289 = vmatprep.subr.bf16.mxu0 %v2288_v52  ;;  %v950_v52 = vld [vmem:[#allocation5 + $0x11c0] sm:$0xff] }
 0x289   : > { %v2326_v8 = vpack.c.bf16 %v956_v54, %v950_v52 }
 0x28b   : > { %2291 = vmatpush1.bf16.msra.mxu0 %v2290_v60 }
 0x28c   : > { %2293 = vmatprep.subr.bf16.mxu0 %v2292_v3  ;;  %v1608_v3 = vrot.slane %v1603_v56, %v2791_v61  ;;  %v1616_v61 = vrot.slane %v1603_v56, %v2793_v62  ;;  %v1628_v62 = vrot.slane %v1603_v56, %v2795_v63 }
 0x28f   : > { %2295 = vmatpush1.bf16.msra.mxu0 %v2294_v12 }
 0x290   : > { %2297 = vmatprep.subr.bf16.mxu0 %v2296_v13  ;;  %v2408_v13 = vld [vmem:[%s2720_s27 + $0x8] sm:$0xff] }
 0x293   : > { %2299 = vmatpush1.bf16.msra.mxu0 %v2298_v18  ;;  %v2410_v18 = vld [vmem:[%s2720_s27 + $0x18] sm:$0xff] }
 0x294   : > { %2301 = vmatprep.subr.bf16.mxu0 %v2300_v19 }
 0x297   : > { %2303 = vmatpush1.bf16.msra.mxu0 %v2302_v24  ;;  %v2411_v24 = vld [vmem:[%s2720_s27 + $0x20] sm:$0xff]  ;;  %s2475_s27 = sshll.u32 %s2547_s23, 4  ;;  %s2476_s27 = int_to_ptr.vmem [resolvable:$false] %s2475_s27 }
 0x298   : > { %2305 = vmatprep.subr.bf16.mxu0 %v2304_v25  ;;  %s2477_s24 = scalar_lea.vmem %s2476_s27, 1536  ;;  %p2478_p10 = scmp.lt.s32.totalorder %s2879_s10, %s2476_s27 }
 0x299   : > { %p2479_p11 = scmp.lt.s32.totalorder %s2477_s24, %s2471_s17 }
 0x29b   : > { %2307 = vmatpush1.bf16.msra.mxu0 %v2306_v29  ;;  %p2480_p3 = por %p2479_p11, %p2478_p10 }
 0x29c   : > { %2309 = vmatprep.subr.bf16.mxu0 %v2308_v30 }
 0x29d   : > { %p2481_p7 = pnand %p2480_p3, %p2474_p8 }
 0x29f   : > { %2311 = vmatpush1.bf16.msra.mxu0 %v2310_v46 }
 0x2a0   : > { %2313 = vmatprep.subr.bf16.mxu0 %v2312_v42 }
 0x2a3   : > { %2315 = vmatpush1.bf16.msra.mxu0 %v2314_v36 }
 0x2a4   : > { %2317 = vmatprep.subr.bf16.mxu0 %v2316_v45 }
 0x2a7   : > { %2319 = vmatpush1.bf16.msra.mxu0 %v2318_v1 }
 0x2a8   : > { %2321 = vmatprep.subr.bf16.mxu0 %v2320_v2 }
 0x2ab   : > { %2323 = vmatpush1.bf16.msra.mxu0 %v2322_v50 }
 0x2ac   : > { %2325 = vmatprep.subr.bf16.mxu0 %v2324_v51 }
 0x2af   : > { %2327 = vmatpush1.bf16.msra.mxu0 %v2326_v8 }
 0x2b2   : > { %1591 = vmatmul.mubr.f32.vlgmr.msra.gmra.mrb[2].mxu0 %v2828_v48 }
 0x2c4   : > { %v1166_v57 = vpop.f32.mrb[0].mxu0 }
 0x2c5   : > { %v2328_v60 = vadd.f32 %v1166_v57, %v2849_v43  ;;  %v1168_v7 = vpop.f32.mrb[1].mxu0 }
 0x2c6   : > { %v2329_v9 = vadd.f32 %v1168_v7, %v2851_v55  ;;  %v1620_v55 = vrot.slane %v1603_v56, %v2786_v59 }
 0x2c7   : > { %v1597_v12 = vadd.f32 %v2407_v11, %v2328_v60 }
 0x2c8   : > { %v1598_v48 = vadd.f32 %v2408_v13, %v2329_v9 }
 0x2c9   : > { %v1635_v14 = vadd.f32 %v1608_v3, %v1597_v12 }
 0x2ca   : > { %v1636_v15 = vadd.f32 %v1612_v10, %v1598_v48 }
 0x2cb   : > { %1641 = vst [vmem:[%s255_s11] sm:$0xff] %v1635_v14 }
 0x2cc   : > { %1642 = vst [vmem:[%s255_s11 + $0x8] sm:$0xff] %v1636_v15 }
 0x344   : > { %v1379_v43 = vpop.f32.mrb[2].mxu1 }
 0x345   : > { %v1599_v58 = vadd.f32 %v2409_v16, %v1379_v43  ;;  %v1381_v17 = vpop.f32.mrb[3].mxu1 }
 0x346   : > { %v1600_v19 = vadd.f32 %v2410_v18, %v1381_v17 }
 0x347   : > { %v1637_v20 = vadd.f32 %v1616_v61, %v1599_v58 }
 0x348   : > { %v1638_v21 = vadd.f32 %v1620_v55, %v1600_v19 }
 0x349   : > { %1643 = vst [vmem:[%s255_s11 + $0x10] sm:$0xff] %v1637_v20 }
 0x34a   : > { %1644 = vst [vmem:[%s255_s11 + $0x18] sm:$0xff] %v1638_v21 }
 0x385   : > { %v1592_v23 = vpop.f32.mrb[2].mxu0 }
 0x386   : > { %v1601_v59 = vadd.f32 %v2411_v24, %v1592_v23  ;;  %v1594_v25 = vpop.f32.mrb[3].mxu0 }
 0x387   : > { %v1602_v27 = vadd.f32 %v2412_v26, %v1594_v25 }
 0x388   : > { %v1639_v44 = vadd.f32 %v1624_v22, %v1601_v59 }
 0x389   : > { %v1640_v28 = vadd.f32 %v1628_v62, %v1602_v27 }
 0x38a   : > { %1645 = vst [vmem:[%s255_s11 + $0x20] sm:$0xff] %v1639_v44 }
 0x38b   : > { %1646 = vst [vmem:[%s255_s11 + $0x28] sm:$0xff] %v1640_v28 }
 0x38c   : > { %2484 = shalt.err (!%p2481_p7)
}
 0x38d   : > { %s2485_s16 = scalar_lea.hbm %s2877_s13, 768  ;;  %s2489_s6 = scalar_lea.hbm %s2926_s5, 1536 }
 0x38e   : > { %p2486_p9 = scmp.ne.s32.totalorder %s2877_s13, %s2485_s16  ;;  %p2490_p0 = scmp.lt.u32.totalorder %s2877_s13, %s2926_s5 }
 0x38f   : > { %p2491_p13 = scmp.lt.u32.totalorder %s2489_s6, %s2485_s16  ;;  %p2493_p4 = scmp.lt.u32.totalorder %s2485_s16, %s2877_s13 }
 0x390   : > { %p2487_p2 = pnand %p2486_p9, %p2669_p12 }
 0x391   : > { %p2492_p1 = por %p2491_p13, %p2490_p0 }
 0x392   : > { %p2488_p5 = pneg %p2487_p2 }
 0x393   : > { %p2494_p6 = por %p2493_p4, %p2492_p1 }
 0x395   : > { %p2495_p8 = pnand %p2494_p6, %p2488_p5 }
 0x397   : > { %2498 = shalt.err (!%p2495_p8)
}
 0x398   : > { %2350 = dma.vmem_to_hbm [thread:$0]  (%p2669_p12), %s2879_s10, 768, %s2877_s13, %s1648_s22  }
 0x399 PF: > { %s1674_s11 = sand.u32 1, %s2529_s18   ;;  %p2941_p10 = scmp.ne.s32.totalorder %s2931_s25, 0 }
 0x39a   : > { %p2942_p11 = scmp.ge.s32.totalorder %s2541_s21, 2  ;;  %s1675_s28 = scalar_lea.sflag [#allocation4], %s1674_s11 }
 0x39c   : > { %p2361_p3 = pnand %p2942_p11, %p2941_p10 }
 0x39e   : > { %2524 = dma.done.wait (!%p2361_p3), %s1675_s28, 768  }
 0x39f   : > { %2526 = vsyncadd (!%p2361_p3), %s1675_s28, 4294966528  ;;  %p19_p7 = scmp.ge.s32.totalorder %s2634_s30, 4   ;;  %s2943_s18 = smov %s2533_s19 }
 0x3a0   : > { %s2944_s19 = smov %s2537_s20  ;;  %s2945_s20 = smov %s2665_s8 }
 0x3a1   : > { %s2946_s21 = smov %s2634_s30  ;;  %21 = sbr.rel (!%p19_p7) target bundleno = 6 (0x6), region = 89 }
 0x3a8   :  { %1680 = vsyncpa [#allocation3], 1 }
 0x3a9   :  { %1682 = vsyncpa [#allocation3 + $0x1], 1 }
 0x3aa   :  { %1683 = vsyncpa [#allocation6], 1 }
 0x3ab   :  { %1684 = vsyncpa [#allocation4], 1 }
 0x3ac   :  { %1686 = vsyncpa [#allocation4 + $0x1], 1 }

</bundles_post_ra>
